<compile_context>
chip_gen: v6e
topology: v6e:2x2x1
jax: 0.10.0
libtpu: 0.0.40
codegen_flags: <defaults>
</compile_context>

<pallas_src>
import jax
import jax.numpy as jnp
from jax.experimental import pallas as pl
from jax.experimental.pallas import tpu as pltpu

D_IN = 784
H1 = 512
H2 = 256
LAT = 2
LAT_PAD = 128      # lane-group boundary used to split the fused mu/log_var matmul


def _round_up(x, m):
    return (x + m - 1) // m * m


def _detect_big_vmem():
    """True on chips with ~128 MiB VMEM (v5e/v6e); False / fallback otherwise."""
    try:
        return int(pltpu.get_tpu_info().vmem_capacity_bytes) >= (100 << 20)
    except Exception:
        return False


_BIG_VMEM = _detect_big_vmem()
MAX_B_TILE = 1024 if _BIG_VMEM else 512
VMEM_LIMIT = (64 << 20) if _BIG_VMEM else (32 << 20)


# ---------------------------------------------------------------------------
# Pallas kernel: full VAE forward (encoder + reparam sample + decoder).
# Matmul inputs are bf16, accumulation + elementwise are f32.
# ---------------------------------------------------------------------------
def vae_kernel(
    x_ref, eps_ref,
    w1_ref, b1_ref,
    w2_ref, b2_ref,
    wml_ref, bml_ref,
    w4_ref, b4_ref,
    w5_ref, b5_ref,
    w6_ref, b6_ref,
    recon_ref, mu_ref, lv_ref,
):
    # ---- encoder ----
    x = x_ref[...].astype(jnp.bfloat16)                               # [Bt, 784]
    h = jnp.dot(x, w1_ref[...],
                preferred_element_type=jnp.float32) + b1_ref[...]
    h = jnp.maximum(h, 0.0).astype(jnp.bfloat16)                      # [Bt, 512] bf16
    h = jnp.dot(h, w2_ref[...],
                preferred_element_type=jnp.float32) + b2_ref[...]
    h = jnp.maximum(h, 0.0).astype(jnp.bfloat16)                      # [Bt, 256] bf16

    # fused mu / log_var projection: one lane-dense [Bt, 256] block,
    # mu lives in lanes [0:2), log_var in lanes [128:130).
    ml = jnp.dot(h, wml_ref[...],
                 preferred_element_type=jnp.float32) + bml_ref[...]
    mu = ml[:, :LAT]                                                  # [Bt, 2] f32
    lv = ml[:, LAT_PAD:LAT_PAD + LAT]                                 # [Bt, 2] f32

    # ---- reparameterization (f32, width 2) ----
    std = jnp.exp(0.5 * lv)
    z = eps_ref[...] * std + mu                                       # [Bt, 2] f32

    # ---- decoder ----
    # fc4 (2 -> 256): two rank-1 VPU updates; no point feeding K=2 to the MXU.
    w4 = w4_ref[...]                                                  # [2, 256] f32
    d = z[:, 0:1] * w4[0:1, :] + z[:, 1:2] * w4[1:2, :] + b4_ref[...]
    d = jnp.maximum(d, 0.0).astype(jnp.bfloat16)                      # [Bt, 256] bf16
    d = jnp.dot(d, w5_ref[...],
                preferred_element_type=jnp.float32) + b5_ref[...]
    d = jnp.maximum(d, 0.0).astype(jnp.bfloat16)                      # [Bt, 512] bf16
    logits = jnp.dot(d, w6_ref[...],
                     preferred_element_type=jnp.float32) + b6_ref[...]

    recon_ref[...] = jax.nn.sigmoid(logits)                           # [Bt, 784] f32
    mu_ref[...] = mu
    lv_ref[...] = lv


# ---------------------------------------------------------------------------
# Parameter construction (deterministic, PyTorch-Linear-style init) in the
# natural (in, out) shapes, then fused/cast for the kernel.
# ---------------------------------------------------------------------------
def init_linear(key, in_f, out_f):
    kw, kb = jax.random.split(key)
    bound = 1.0 / jnp.sqrt(jnp.float32(in_f))
    w = jax.random.uniform(kw, (in_f, out_f), jnp.float32, -bound, bound)
    b = jax.random.uniform(kb, (1, out_f), jnp.float32, -bound, bound)
    return w, b


def init_params(key):
    dims = [(784, 512), (512, 256), (256, 2), (256, 2),
            (2, 256), (256, 512), (512, 784)]
    keys = jax.random.split(key, len(dims))
    params = []
    for k, (i, o) in zip(keys, dims):
        params.extend(init_linear(k, i, o))
    return params  # [w1,b1, w2,b2, w31,b31, w32,b32, w4,b4, w5,b5, w6,b6]


def prepare_params(params):
    """Fuse fc31/fc32 into one lane-dense projection; cast MXU weights to bf16."""
    (w1, b1, w2, b2, w31, b31, w32, b32, w4, b4, w5, b5, w6, b6) = params
    f32, bf16 = jnp.float32, jnp.bfloat16

    wml = jnp.zeros((H2, 2 * LAT_PAD), f32)
    wml = wml.at[:, :LAT].set(w31).at[:, LAT_PAD:LAT_PAD + LAT].set(w32)
    bml = jnp.zeros((1, 2 * LAT_PAD), f32)
    bml = bml.at[:, :LAT].set(b31).at[:, LAT_PAD:LAT_PAD + LAT].set(b32)

    return (w1.astype(bf16), b1,
            w2.astype(bf16), b2,
            wml.astype(bf16), bml,
            w4, b4,                       # fc4 stays f32 (applied on the VPU)
            w5.astype(bf16), b5,
            w6.astype(bf16), b6)


# ---------------------------------------------------------------------------
# Wrapper: tile the batch axis (>= 2 grid steps so v7x's two TCs both work),
# keep real (unpadded) feature widths, run the kernel.
# ---------------------------------------------------------------------------
@jax.jit
def linear_vae_forward(x, eps, packed_params):
    x_flat = x.reshape(-1, D_IN).astype(jnp.float32)    # == x.view(-1, 784)
    eps_f = eps.astype(jnp.float32)
    B = x_flat.shape[0]

    # Batch tile: target >= 2 grid steps (megacore split on v7x), cap per chip.
    b_tile = min(MAX_B_TILE, max(8, _round_up(pl.cdiv(B, 2), 8)))
    n_tiles = max(2, pl.cdiv(B, b_tile))
    b_pad = n_tiles * b_tile

    if b_pad != B:                                       # row pad only if needed
        pad = b_pad - B
        x_in = jnp.pad(x_flat, ((0, pad), (0, 0)))
        eps_in = jnp.pad(eps_f, ((0, pad), (0, 0)))
    else:
        x_in, eps_in = x_flat, eps_f

    def batch_spec(cols):
        return pl.BlockSpec((b_tile, cols), lambda i: (i, 0))

    def resident(shape):                 # constant index_map: fetched once, stays in VMEM
        return pl.BlockSpec(shape, lambda i: (0,) * len(shape))

    in_specs = [batch_spec(D_IN), batch_spec(LAT)]
    in_specs += [resident(p.shape) for p in packed_params]

    out_specs = (batch_spec(D_IN), batch_spec(LAT), batch_spec(LAT))
    out_shapes = (
        jax.ShapeDtypeStruct((b_pad, D_IN), jnp.float32),   # reconstruction (784-wide)
        jax.ShapeDtypeStruct((b_pad, LAT), jnp.float32),    # mu
        jax.ShapeDtypeStruct((b_pad, LAT), jnp.float32),    # log_var
    )

    weight_bytes = sum(int(p.size) * jnp.dtype(p.dtype).itemsize
                       for p in packed_params)
    io_bytes = b_pad * (D_IN * 4 + LAT * 4 + D_IN * 4 + 2 * LAT * 4)
    flops = 2 * b_pad * (D_IN * H1 + H1 * H2 + H2 * 2 * LAT_PAD
                         + LAT * H2 + H2 * H1 + H1 * D_IN)
    cost = pl.CostEstimate(flops=flops,
                           transcendentals=b_pad * (D_IN + LAT),
                           bytes_accessed=weight_bytes + io_bytes)

    recon_p, mu_p, lv_p = pl.pallas_call(
        vae_kernel,
        out_shape=out_shapes,
        grid=(n_tiles,),
        in_specs=in_specs,
        out_specs=out_specs,
        compiler_params=pltpu.CompilerParams(
            dimension_semantics=("parallel",),
            vmem_limit_bytes=VMEM_LIMIT),
        cost_estimate=cost,
    )(x_in, eps_in, *packed_params)

    return recon_p[:B], mu_p[:B], lv_p[:B]


if __name__ == "__main__":
    key = jax.random.PRNGKey(0)
    k_params, k_x, k_eps = jax.random.split(key, 3)

    # Small MNIST-like input: batch=2, 1x28x28 (flattens to 784).
    x = jax.random.normal(k_x, (2, 1, 28, 28), jnp.float32)
    # eps ~ N(0, 1) stands in for torch.randn_like(std); shape (B, 2).
    eps = jax.random.normal(k_eps, (2, LAT), jnp.float32)

    params = init_params(k_params)
    packed = prepare_params(params)

    recon, mu, log_var = linear_vae_forward(x, eps, packed)
    jax.block_until_ready((recon, mu, log_var))

    assert recon.shape == (2, D_IN) and mu.shape == (2, LAT) and log_var.shape == (2, LAT)
    assert bool(jnp.all(jnp.isfinite(recon)))
    assert bool(jnp.all((recon >= 0.0) & (recon <= 1.0)))

    # Pure-JAX f32 reference; loose tolerance because matmuls run in bf16.
    def ref_forward(params, x, eps):
        (w1, b1, w2, b2, w31, b31, w32, b32, w4, b4, w5, b5, w6, b6) = params
        xf = x.reshape(-1, D_IN)
        h = jax.nn.relu(xf @ w1 + b1)
        h = jax.nn.relu(h @ w2 + b2)
        mu_r = h @ w31 + b31
        lv_r = h @ w32 + b32
        z = eps * jnp.exp(0.5 * lv_r) + mu_r
        d = jax.nn.relu(z @ w4 + b4)
        d = jax.nn.relu(d @ w5 + b5)
        return jax.nn.sigmoid(d @ w6 + b6), mu_r, lv_r

    r_ref, mu_ref_v, lv_ref_v = ref_forward(params, x, eps)
    assert bool(jnp.allclose(recon, r_ref, atol=5e-2, rtol=5e-2))
    assert bool(jnp.allclose(mu, mu_ref_v, atol=5e-2, rtol=5e-2))
    assert bool(jnp.allclose(log_var, lv_ref_v, atol=5e-2, rtol=5e-2))

    print("KERNEL_OK")
</pallas_src>

<mosaic_0001>
module attributes {stable_mosaic.version = 11 : i64} {
  func.func @vae_kernel(%arg0: i32, %arg1: memref<8x784xf32, #tpu.memory_space<vmem>>, %arg2: memref<8x2xf32, #tpu.memory_space<vmem>>, %arg3: memref<784x512xbf16, #tpu.memory_space<vmem>>, %arg4: memref<1x512xf32, #tpu.memory_space<vmem>>, %arg5: memref<512x256xbf16, #tpu.memory_space<vmem>>, %arg6: memref<1x256xf32, #tpu.memory_space<vmem>>, %arg7: memref<256x256xbf16, #tpu.memory_space<vmem>>, %arg8: memref<1x256xf32, #tpu.memory_space<vmem>>, %arg9: memref<2x256xf32, #tpu.memory_space<vmem>>, %arg10: memref<1x256xf32, #tpu.memory_space<vmem>>, %arg11: memref<256x512xbf16, #tpu.memory_space<vmem>>, %arg12: memref<1x512xf32, #tpu.memory_space<vmem>>, %arg13: memref<512x784xbf16, #tpu.memory_space<vmem>>, %arg14: memref<1x784xf32, #tpu.memory_space<vmem>>, %arg15: memref<8x784xf32, #tpu.memory_space<vmem>>, %arg16: memref<8x2xf32, #tpu.memory_space<vmem>>, %arg17: memref<8x2xf32, #tpu.memory_space<vmem>>) attributes {dimension_semantics = [#tpu.dimension_semantics<parallel>], iteration_bounds = array<i64: 2>, scalar_prefetch = 0 : i64, scratch_operands = 0 : i64, tpu.core_type = #tpu.core_type<tc>, window_params = [{transform_indices = @transform_0, window_bounds = array<i64: 8, 784>}, {transform_indices = @transform_1, window_bounds = array<i64: 8, 2>}, {pipeline_mode = #tpu.pipeline_mode<synchronous>, transform_indices = @transform_2, window_bounds = array<i64: 784, 512>}, {pipeline_mode = #tpu.pipeline_mode<synchronous>, transform_indices = @transform_3, window_bounds = array<i64: 1, 512>}, {pipeline_mode = #tpu.pipeline_mode<synchronous>, transform_indices = @transform_4, window_bounds = array<i64: 512, 256>}, {pipeline_mode = #tpu.pipeline_mode<synchronous>, transform_indices = @transform_5, window_bounds = array<i64: 1, 256>}, {pipeline_mode = #tpu.pipeline_mode<synchronous>, transform_indices = @transform_6, window_bounds = array<i64: 256, 256>}, {pipeline_mode = #tpu.pipeline_mode<synchronous>, transform_indices = @transform_7, window_bounds = array<i64: 1, 256>}, {pipeline_mode = #tpu.pipeline_mode<synchronous>, transform_indices = @transform_8, window_bounds = array<i64: 2, 256>}, {pipeline_mode = #tpu.pipeline_mode<synchronous>, transform_indices = @transform_9, window_bounds = array<i64: 1, 256>}, {pipeline_mode = #tpu.pipeline_mode<synchronous>, transform_indices = @transform_10, window_bounds = array<i64: 256, 512>}, {pipeline_mode = #tpu.pipeline_mode<synchronous>, transform_indices = @transform_11, window_bounds = array<i64: 1, 512>}, {pipeline_mode = #tpu.pipeline_mode<synchronous>, transform_indices = @transform_12, window_bounds = array<i64: 512, 784>}, {pipeline_mode = #tpu.pipeline_mode<synchronous>, transform_indices = @transform_13, window_bounds = array<i64: 1, 784>}, {transform_indices = @transform_14, window_bounds = array<i64: 8, 784>}, {transform_indices = @transform_15, window_bounds = array<i64: 8, 2>}, {transform_indices = @transform_16, window_bounds = array<i64: 8, 2>}]} {
    %c0 = arith.constant 0 : index
    %c0_0 = arith.constant 0 : index
    %0 = vector.load %arg1[%c0, %c0_0] : memref<8x784xf32, #tpu.memory_space<vmem>>, vector<8x784xf32>
    %1 = arith.truncf %0 : vector<8x784xf32> to vector<8x784xbf16>
    %c0_1 = arith.constant 0 : index
    %c0_2 = arith.constant 0 : index
    %2 = vector.load %arg3[%c0_1, %c0_2] : memref<784x512xbf16, #tpu.memory_space<vmem>>, vector<784x512xbf16>
    %cst = arith.constant dense<0.000000e+00> : vector<8x512xf32>
    %3 = tpu.matmul %1, %2, %cst {dimension_numbers = #tpu.dot_dimension_numbers<[1], [0], [0], [1], [0, 0, 1, 1], [], []>} : vector<8x784xbf16>, vector<784x512xbf16>, vector<8x512xf32> -> vector<8x512xf32>
    %c0_3 = arith.constant 0 : index
    %c0_4 = arith.constant 0 : index
    %4 = vector.load %arg4[%c0_3, %c0_4] : memref<1x512xf32, #tpu.memory_space<vmem>>, vector<1x512xf32>
    %5 = vector.broadcast %4 : vector<1x512xf32> to vector<8x512xf32>
    %6 = arith.addf %3, %5 : vector<8x512xf32>
    %cst_5 = arith.constant 0.000000e+00 : f32
    %7 = vector.broadcast %cst_5 : f32 to vector<8x512xf32>
    %8 = arith.maximumf %6, %7 : vector<8x512xf32>
    %9 = arith.truncf %8 : vector<8x512xf32> to vector<8x512xbf16>
    %c0_6 = arith.constant 0 : index
    %c0_7 = arith.constant 0 : index
    %10 = vector.load %arg5[%c0_6, %c0_7] : memref<512x256xbf16, #tpu.memory_space<vmem>>, vector<512x256xbf16>
    %cst_8 = arith.constant dense<0.000000e+00> : vector<8x256xf32>
    %11 = tpu.matmul %9, %10, %cst_8 {dimension_numbers = #tpu.dot_dimension_numbers<[1], [0], [0], [1], [0, 0, 1, 1], [], []>} : vector<8x512xbf16>, vector<512x256xbf16>, vector<8x256xf32> -> vector<8x256xf32>
    %c0_9 = arith.constant 0 : index
    %c0_10 = arith.constant 0 : index
    %12 = vector.load %arg6[%c0_9, %c0_10] : memref<1x256xf32, #tpu.memory_space<vmem>>, vector<1x256xf32>
    %13 = vector.broadcast %12 : vector<1x256xf32> to vector<8x256xf32>
    %14 = arith.addf %11, %13 : vector<8x256xf32>
    %cst_11 = arith.constant 0.000000e+00 : f32
    %15 = vector.broadcast %cst_11 : f32 to vector<8x256xf32>
    %16 = arith.maximumf %14, %15 : vector<8x256xf32>
    %17 = arith.truncf %16 : vector<8x256xf32> to vector<8x256xbf16>
    %c0_12 = arith.constant 0 : index
    %c0_13 = arith.constant 0 : index
    %18 = vector.load %arg7[%c0_12, %c0_13] : memref<256x256xbf16, #tpu.memory_space<vmem>>, vector<256x256xbf16>
    %cst_14 = arith.constant dense<0.000000e+00> : vector<8x256xf32>
    %19 = tpu.matmul %17, %18, %cst_14 {dimension_numbers = #tpu.dot_dimension_numbers<[1], [0], [0], [1], [0, 0, 1, 1], [], []>} : vector<8x256xbf16>, vector<256x256xbf16>, vector<8x256xf32> -> vector<8x256xf32>
    %c0_15 = arith.constant 0 : index
    %c0_16 = arith.constant 0 : index
    %20 = vector.load %arg8[%c0_15, %c0_16] : memref<1x256xf32, #tpu.memory_space<vmem>>, vector<1x256xf32>
    %21 = vector.broadcast %20 : vector<1x256xf32> to vector<8x256xf32>
    %22 = arith.addf %19, %21 : vector<8x256xf32>
    %23 = vector.extract_strided_slice %22 {offsets = [0, 0], sizes = [8, 2], strides = [1, 1]} : vector<8x256xf32> to vector<8x2xf32>
    %24 = vector.extract_strided_slice %22 {offsets = [0, 128], sizes = [8, 2], strides = [1, 1]} : vector<8x256xf32> to vector<8x2xf32>
    %cst_17 = arith.constant 5.000000e-01 : f32
    %25 = vector.broadcast %cst_17 : f32 to vector<8x2xf32>
    %26 = arith.mulf %25, %24 : vector<8x2xf32>
    %27 = math.exp %26 : vector<8x2xf32>
    %c0_18 = arith.constant 0 : index
    %c0_19 = arith.constant 0 : index
    %28 = vector.load %arg2[%c0_18, %c0_19] : memref<8x2xf32, #tpu.memory_space<vmem>>, vector<8x2xf32>
    %29 = arith.mulf %28, %27 : vector<8x2xf32>
    %30 = arith.addf %29, %23 : vector<8x2xf32>
    %c0_20 = arith.constant 0 : index
    %c0_21 = arith.constant 0 : index
    %31 = vector.load %arg9[%c0_20, %c0_21] : memref<2x256xf32, #tpu.memory_space<vmem>>, vector<2x256xf32>
    %32 = vector.extract_strided_slice %30 {offsets = [0, 0], sizes = [8, 1], strides = [1, 1]} : vector<8x2xf32> to vector<8x1xf32>
    %33 = vector.extract_strided_slice %31 {offsets = [0, 0], sizes = [1, 256], strides = [1, 1]} : vector<2x256xf32> to vector<1x256xf32>
    %34 = vector.broadcast %32 : vector<8x1xf32> to vector<8x256xf32>
    %35 = vector.broadcast %33 : vector<1x256xf32> to vector<8x256xf32>
    %36 = arith.mulf %34, %35 : vector<8x256xf32>
    %37 = vector.extract_strided_slice %30 {offsets = [0, 1], sizes = [8, 1], strides = [1, 1]} : vector<8x2xf32> to vector<8x1xf32>
    %38 = vector.extract_strided_slice %31 {offsets = [1, 0], sizes = [1, 256], strides = [1, 1]} : vector<2x256xf32> to vector<1x256xf32>
    %39 = vector.broadcast %37 : vector<8x1xf32> to vector<8x256xf32>
    %40 = vector.broadcast %38 : vector<1x256xf32> to vector<8x256xf32>
    %41 = arith.mulf %39, %40 : vector<8x256xf32>
    %42 = arith.addf %36, %41 : vector<8x256xf32>
    %c0_22 = arith.constant 0 : index
    %c0_23 = arith.constant 0 : index
    %43 = vector.load %arg10[%c0_22, %c0_23] : memref<1x256xf32, #tpu.memory_space<vmem>>, vector<1x256xf32>
    %44 = vector.broadcast %43 : vector<1x256xf32> to vector<8x256xf32>
    %45 = arith.addf %42, %44 : vector<8x256xf32>
    %cst_24 = arith.constant 0.000000e+00 : f32
    %46 = vector.broadcast %cst_24 : f32 to vector<8x256xf32>
    %47 = arith.maximumf %45, %46 : vector<8x256xf32>
    %48 = arith.truncf %47 : vector<8x256xf32> to vector<8x256xbf16>
    %c0_25 = arith.constant 0 : index
    %c0_26 = arith.constant 0 : index
    %49 = vector.load %arg11[%c0_25, %c0_26] : memref<256x512xbf16, #tpu.memory_space<vmem>>, vector<256x512xbf16>
    %cst_27 = arith.constant dense<0.000000e+00> : vector<8x512xf32>
    %50 = tpu.matmul %48, %49, %cst_27 {dimension_numbers = #tpu.dot_dimension_numbers<[1], [0], [0], [1], [0, 0, 1, 1], [], []>} : vector<8x256xbf16>, vector<256x512xbf16>, vector<8x512xf32> -> vector<8x512xf32>
    %c0_28 = arith.constant 0 : index
    %c0_29 = arith.constant 0 : index
    %51 = vector.load %arg12[%c0_28, %c0_29] : memref<1x512xf32, #tpu.memory_space<vmem>>, vector<1x512xf32>
    %52 = vector.broadcast %51 : vector<1x512xf32> to vector<8x512xf32>
    %53 = arith.addf %50, %52 : vector<8x512xf32>
    %cst_30 = arith.constant 0.000000e+00 : f32
    %54 = vector.broadcast %cst_30 : f32 to vector<8x512xf32>
    %55 = arith.maximumf %53, %54 : vector<8x512xf32>
    %56 = arith.truncf %55 : vector<8x512xf32> to vector<8x512xbf16>
    %c0_31 = arith.constant 0 : index
    %c0_32 = arith.constant 0 : index
    %57 = vector.load %arg13[%c0_31, %c0_32] : memref<512x784xbf16, #tpu.memory_space<vmem>>, vector<512x784xbf16>
    %cst_33 = arith.constant dense<0.000000e+00> : vector<8x784xf32>
    %58 = tpu.matmul %56, %57, %cst_33 {dimension_numbers = #tpu.dot_dimension_numbers<[1], [0], [0], [1], [0, 0, 1, 1], [], []>} : vector<8x512xbf16>, vector<512x784xbf16>, vector<8x784xf32> -> vector<8x784xf32>
    %c0_34 = arith.constant 0 : index
    %c0_35 = arith.constant 0 : index
    %59 = vector.load %arg14[%c0_34, %c0_35] : memref<1x784xf32, #tpu.memory_space<vmem>>, vector<1x784xf32>
    %60 = vector.broadcast %59 : vector<1x784xf32> to vector<8x784xf32>
    %61 = arith.addf %58, %60 : vector<8x784xf32>
    %62 = arith.negf %61 : vector<8x784xf32>
    %63 = math.exp %62 : vector<8x784xf32>
    %cst_36 = arith.constant 1.000000e+00 : f32
    %64 = vector.broadcast %cst_36 : f32 to vector<8x784xf32>
    %65 = arith.addf %64, %63 : vector<8x784xf32>
    %66 = arith.divf %64, %65 : vector<8x784xf32>
    %c0_37 = arith.constant 0 : index
    %c0_38 = arith.constant 0 : index
    %67 = vector.load %arg15[%c0_37, %c0_38] : memref<8x784xf32, #tpu.memory_space<vmem>>, vector<8x784xf32>
    tpu.vector_store %arg15[%c0_37, %c0_38], %66 {strides = array<i32>} : memref<8x784xf32, #tpu.memory_space<vmem>>, vector<8x784xf32>,
    %c0_39 = arith.constant 0 : index
    %c0_40 = arith.constant 0 : index
    %68 = vector.load %arg16[%c0_39, %c0_40] : memref<8x2xf32, #tpu.memory_space<vmem>>, vector<8x2xf32>
    tpu.vector_store %arg16[%c0_39, %c0_40], %23 {strides = array<i32>} : memref<8x2xf32, #tpu.memory_space<vmem>>, vector<8x2xf32>,
    %c0_41 = arith.constant 0 : index
    %c0_42 = arith.constant 0 : index
    %69 = vector.load %arg17[%c0_41, %c0_42] : memref<8x2xf32, #tpu.memory_space<vmem>>, vector<8x2xf32>
    tpu.vector_store %arg17[%c0_41, %c0_42], %24 {strides = array<i32>} : memref<8x2xf32, #tpu.memory_space<vmem>>, vector<8x2xf32>,
    return
  }
  func.func @transform_0(%arg0: i32) -> (i32, i32) {
    %c0_i32 = arith.constant 0 : i32
    %c0_i32_0 = arith.constant 0 : i32
    return %arg0, %c0_i32 : i32, i32
  }
  func.func @transform_1(%arg0: i32) -> (i32, i32) {
    %c0_i32 = arith.constant 0 : i32
    %c0_i32_0 = arith.constant 0 : i32
    return %arg0, %c0_i32 : i32, i32
  }
  func.func @transform_2(%arg0: i32) -> (i32, i32) {
    %c0_i32 = arith.constant 0 : i32
    %c0_i32_0 = arith.constant 0 : i32
    %c0_i32_1 = arith.constant 0 : i32
    return %c0_i32, %c0_i32_0 : i32, i32
  }
  func.func @transform_3(%arg0: i32) -> (i32, i32) {
    %c0_i32 = arith.constant 0 : i32
    %c0_i32_0 = arith.constant 0 : i32
    %c0_i32_1 = arith.constant 0 : i32
    return %c0_i32, %c0_i32_0 : i32, i32
  }
  func.func @transform_4(%arg0: i32) -> (i32, i32) {
    %c0_i32 = arith.constant 0 : i32
    %c0_i32_0 = arith.constant 0 : i32
    %c0_i32_1 = arith.constant 0 : i32
    return %c0_i32, %c0_i32_0 : i32, i32
  }
  func.func @transform_5(%arg0: i32) -> (i32, i32) {
    %c0_i32 = arith.constant 0 : i32
    %c0_i32_0 = arith.constant 0 : i32
    %c0_i32_1 = arith.constant 0 : i32
    return %c0_i32, %c0_i32_0 : i32, i32
  }
  func.func @transform_6(%arg0: i32) -> (i32, i32) {
    %c0_i32 = arith.constant 0 : i32
    %c0_i32_0 = arith.constant 0 : i32
    %c0_i32_1 = arith.constant 0 : i32
    return %c0_i32, %c0_i32_0 : i32, i32
  }
  func.func @transform_7(%arg0: i32) -> (i32, i32) {
    %c0_i32 = arith.constant 0 : i32
    %c0_i32_0 = arith.constant 0 : i32
    %c0_i32_1 = arith.constant 0 : i32
    return %c0_i32, %c0_i32_0 : i32, i32
  }
  func.func @transform_8(%arg0: i32) -> (i32, i32) {
    %c0_i32 = arith.constant 0 : i32
    %c0_i32_0 = arith.constant 0 : i32
    %c0_i32_1 = arith.constant 0 : i32
    return %c0_i32, %c0_i32_0 : i32, i32
  }
  func.func @transform_9(%arg0: i32) -> (i32, i32) {
    %c0_i32 = arith.constant 0 : i32
    %c0_i32_0 = arith.constant 0 : i32
    %c0_i32_1 = arith.constant 0 : i32
    return %c0_i32, %c0_i32_0 : i32, i32
  }
  func.func @transform_10(%arg0: i32) -> (i32, i32) {
    %c0_i32 = arith.constant 0 : i32
    %c0_i32_0 = arith.constant 0 : i32
    %c0_i32_1 = arith.constant 0 : i32
    return %c0_i32, %c0_i32_0 : i32, i32
  }
  func.func @transform_11(%arg0: i32) -> (i32, i32) {
    %c0_i32 = arith.constant 0 : i32
    %c0_i32_0 = arith.constant 0 : i32
    %c0_i32_1 = arith.constant 0 : i32
    return %c0_i32, %c0_i32_0 : i32, i32
  }
  func.func @transform_12(%arg0: i32) -> (i32, i32) {
    %c0_i32 = arith.constant 0 : i32
    %c0_i32_0 = arith.constant 0 : i32
    %c0_i32_1 = arith.constant 0 : i32
    return %c0_i32, %c0_i32_0 : i32, i32
  }
  func.func @transform_13(%arg0: i32) -> (i32, i32) {
    %c0_i32 = arith.constant 0 : i32
    %c0_i32_0 = arith.constant 0 : i32
    %c0_i32_1 = arith.constant 0 : i32
    return %c0_i32, %c0_i32_0 : i32, i32
  }
  func.func @transform_14(%arg0: i32) -> (i32, i32) {
    %c0_i32 = arith.constant 0 : i32
    %c0_i32_0 = arith.constant 0 : i32
    return %arg0, %c0_i32 : i32, i32
  }
  func.func @transform_15(%arg0: i32) -> (i32, i32) {
    %c0_i32 = arith.constant 0 : i32
    %c0_i32_0 = arith.constant 0 : i32
    return %arg0, %c0_i32 : i32, i32
  }
  func.func @transform_16(%arg0: i32) -> (i32, i32) {
    %c0_i32 = arith.constant 0 : i32
    %c0_i32_0 = arith.constant 0 : i32
    return %arg0, %c0_i32 : i32, i32
  }
}

</mosaic_0001>

<bundles_post_ra>
// kernel: linear_vae_forward.1
= control target key start
LH: loop header
LB: loop body
LE: loop exit
PB: predicated region body
PF: predicated region fallthrough
CT: control target
= control target key end

     0   :  { %s7002_s21 = smov 0   ;;  %s8929_s0 = inlined_call_operand.vmem [shape: f32[16,784], index: 0, kind: input, shape index: {}]   ;;  %s8930_s1 = inlined_call_operand.vmem [shape: f32[16,2], index: 1, kind: input, shape index: {}]   ;;  %s8931_s2 = inlined_call_operand.vmem [shape: bf16[784,512], index: 2, kind: input, shape index: {}]   ;;  %s8932_s3 = inlined_call_operand.vmem [shape: f32[1,512], index: 3, kind: input, shape index: {}]   ;;  %s8933_s4 = inlined_call_operand.vmem [shape: bf16[512,256], index: 4, kind: input, shape index: {}]   ;;  %s8934_s5 = inlined_call_operand.vmem [shape: f32[1,256], index: 5, kind: input, shape index: {}]   ;;  %s8935_s6 = inlined_call_operand.vmem [shape: bf16[256,256], index: 6, kind: input, shape index: {}]   ;;  %s8936_s7 = inlined_call_operand.vmem [shape: f32[1,256], index: 7, kind: input, shape index: {}]   ;;  %s8937_s8 = inlined_call_operand.vmem [shape: f32[2,256], index: 8, kind: input, shape index: {}]   ;;  %s8938_s9 = inlined_call_operand.vmem [shape: f32[1,256], index: 9, kind: input, shape index: {}]   ;;  %s8939_s10 = inlined_call_operand.vmem [shape: bf16[256,512], index: 10, kind: input, shape index: {}]   ;;  %s8940_s11 = inlined_call_operand.vmem [shape: f32[1,512], index: 11, kind: input, shape index: {}]   ;;  %s8941_s12 = inlined_call_operand.vmem [shape: bf16[512,784], index: 12, kind: input, shape index: {}]   ;;  %s8942_s13 = inlined_call_operand.vmem [shape: f32[1,784], index: 13, kind: input, shape index: {}]   ;;  %s8943_s14 = inlined_call_operand.vmem [shape: f32[16,784], index: 14, kind: output, shape index: {0}]   ;;  %s8944_s15 = inlined_call_operand.vmem [shape: f32[16,2], index: 15, kind: output, shape index: {1}]   ;;  %s8945_s16 = inlined_call_operand.vmem [shape: f32[16,2], index: 16, kind: output, shape index: {2}]  }
   0x1   :  { %8946 = sst [smem:[#allocation2_spill]] %s8929_s0 }
   0x2 LB: > { %s5365_s22 = sadd.s32 4294967295, %s6913_s21   ;;  %p5369_p0 = scmp.ge.s32.totalorder %s6913_s21, 1  ;;  %s6913_s21 = sphi %s7002_s21, %s27_s21  }
   0x3   : > { %p476_p1 = scmp.lt.s32.totalorder %s6913_s21, 3 }
   0x5   : > { %p477_p2 = pnand %p5369_p0, %p476_p1 }
   0x6   : > { %p538_p3 = scmp.lt.s32.totalorder (!%p477_p2), %s5365_s22, 1  ;;  %s8947_s24 = sld [smem:[#allocation2_spill]] (!%p477_p2) }
   0x7   : > { %480 = sbr.rel (%p477_p2) target bundleno = 1605 (0x645), region = 76 }
   0xc   : > { %v6023_v0 = vld [vmem:[%s8931_s2 + $0xe4] ss:$16 sps:$4 sm:$0xff]   ;;  %v6915_v2 = vmov 0   ;;  %v6027_v3 = vld [vmem:[%s8931_s2 + $0xe0] ss:$16 sps:$4 sm:$0xff]   ;;  %s8949_s22 = smov (!%p538_p3, %s5365_s22), 1 }
   0xd   : > { %v6025_v1 = vld [vmem:[%s8931_s2 + $0x2e4] ss:$16 sps:$4 sm:$0xff]   ;;  %6021 = vset.pattern.permute.xlu0 %v6915_v2  ;;  %1777 = vmatprep.subr.bf16.mxu0 %v6023_v0  ;;  %v6028_v4 = vld [vmem:[%s8931_s2 + $0x2e0] ss:$16 sps:$4 sm:$0xff]   ;;  %s6010_s23 = smul.u32 56, %s8949_s22  ;;  %vm1773_vm0 = vcmask 130048  }
   0xe   : > { %1818 = vmatprep.subr.bf16.mxu1 %v6025_v1  ;;  %v6029_v5 = vld [vmem:[%s8931_s2 + $0xc4] ss:$16 sps:$4 sm:$0xff]   ;;  %1778 = vmatpush1.bf16.msra.mxu0 %v6027_v3  ;;  %v6033_v7 = vld [vmem:[%s8931_s2 + $0xc0] ss:$16 sps:$4 sm:$0xff]   ;;  %s5371_s27 = sshll.u32 %s8949_s22, 3  ;;  %vm5233_vm1 = vcmask 15360  }
   0xf   : > { %1819 = vmatpush1.bf16.msra.mxu1 %v6028_v4  ;;  %v6031_v6 = vld [vmem:[%s8931_s2 + $0x2c4] ss:$16 sps:$4 sm:$0xff]   ;;  %1779 = vmatprep.subr.bf16.mxu0 %v6029_v5  ;;  %v6034_v8 = vld [vmem:[%s8931_s2 + $0x2c0] ss:$16 sps:$4 sm:$0xff]   ;;  %s7155_s25 = scalar_lea.vmem %s8947_s24, %s6010_s23  ;;  %s555_s30 = scalar_lea.vmem %s8944_s15, %s5371_s27 }
  0x10   : > { %1820 = vmatprep.subr.bf16.mxu1 %v6031_v6  ;;  %v6035_v9 = vld [vmem:[%s8931_s2 + $0xa4] ss:$16 sps:$4 sm:$0xff]   ;;  %v6039_v11 = vld [vmem:[%s8931_s2 + $0xa0] ss:$16 sps:$4 sm:$0xff]   ;;  %v562_v47 = vld [vmem:[%s7155_s25 + $0x8] sm:$0xff]  ;;  %s559_s18 = scalar_lea.vmem %s8945_s16, %s5371_s27  ;;  %s546_s20 = scalar_lea.vmem %s8930_s1, %s5371_s27 }
  0x11   : > { %v6037_v10 = vld [vmem:[%s8931_s2 + $0x2a4] ss:$16 sps:$4 sm:$0xff]   ;;  %v6040_v12 = vld [vmem:[%s8931_s2 + $0x2a0] ss:$16 sps:$4 sm:$0xff]   ;;  %v7170_v50 = vpack.c.bf16 %v562_v47, %v562_v47  ;;  %v564_v51 = vld [vmem:[%s7155_s25 + $0x18] sm:$0xff]  ;;  %s8906_s19 = scalar_lea.vmem %s8943_s14, %s6010_s23 }
  0x12   : > { %1780 = vmatpush1.bf16.msra.mxu0 %v6033_v7  ;;  %v6041_v13 = vld [vmem:[%s8931_s2 + $0x84] ss:$16 sps:$4 sm:$0xff]   ;;  %v6045_v15 = vld [vmem:[%s8931_s2 + $0x80] ss:$16 sps:$4 sm:$0xff]   ;;  %v7176_v53 = vpack.c.bf16 %v564_v51, %v564_v51 }
  0x13   : > { %1821 = vmatpush1.bf16.msra.mxu1 %v6034_v8  ;;  %1781 = vmatprep.subr.bf16.mxu0 %v6035_v9  ;;  %v6043_v14 = vld [vmem:[%s8931_s2 + $0x284] ss:$16 sps:$4 sm:$0xff]   ;;  %v6046_v16 = vld [vmem:[%s8931_s2 + $0x280] ss:$16 sps:$4 sm:$0xff]  }
  0x14   : > { %1822 = vmatprep.subr.bf16.mxu1 %v6037_v10  ;;  %v6047_v17 = vld [vmem:[%s8931_s2 + $0x64] ss:$16 sps:$4 sm:$0xff]   ;;  %v6051_v19 = vld [vmem:[%s8931_s2 + $0x60] ss:$16 sps:$4 sm:$0xff]   ;;  %1809 = vmatprep.mubr.bf16.mxu0 %v7170_v50 }
  0x15   : > { %v6049_v18 = vld [vmem:[%s8931_s2 + $0x264] ss:$16 sps:$4 sm:$0xff]   ;;  %v6052_v20 = vld [vmem:[%s8931_s2 + $0x260] ss:$16 sps:$4 sm:$0xff]   ;;  %1850 = vmatprep.mubr.bf16.mxu1 %v7176_v53 }
  0x16   : > { %1782 = vmatpush1.bf16.msra.mxu0 %v6039_v11  ;;  %v6053_v21 = vld [vmem:[%s8931_s2 + $0x44] ss:$16 sps:$4 sm:$0xff]   ;;  %v6057_v23 = vld [vmem:[%s8931_s2 + $0x40] ss:$16 sps:$4 sm:$0xff]  }
  0x17   : > { %1823 = vmatpush1.bf16.msra.mxu1 %v6040_v12  ;;  %1783 = vmatprep.subr.bf16.mxu0 %v6041_v13  ;;  %v6055_v22 = vld [vmem:[%s8931_s2 + $0x244] ss:$16 sps:$4 sm:$0xff]   ;;  %v6058_v24 = vld [vmem:[%s8931_s2 + $0x240] ss:$16 sps:$4 sm:$0xff]  }
  0x18   : > { %1824 = vmatprep.subr.bf16.mxu1 %v6043_v14  ;;  %v6059_v25 = vld [vmem:[%s8931_s2 + $0x24] ss:$16 sps:$4 sm:$0xff]   ;;  %v6063_v27 = vld [vmem:[%s8931_s2 + $0x20] ss:$16 sps:$4 sm:$0xff]  }
  0x19   : > { %v6061_v26 = vld [vmem:[%s8931_s2 + $0x224] ss:$16 sps:$4 sm:$0xff]   ;;  %v6064_v28 = vld [vmem:[%s8931_s2 + $0x220] ss:$16 sps:$4 sm:$0xff]  }
  0x1a   : > { %1784 = vmatpush1.bf16.msra.mxu0 %v6045_v15  ;;  %v6065_v29 = vld [vmem:[%s8931_s2 + $0x4] ss:$16 sps:$4 sm:$0xff]   ;;  %v6069_v31 = vld [vmem:[%s8931_s2] ss:$16 sps:$4 sm:$0xff]   ;;  %v6130_v15 = vld [vmem:[%s8931_s2 + $0xec] ss:$16 sps:$4 sm:$0xff]  }
  0x1b   : > { %1825 = vmatpush1.bf16.msra.mxu1 %v6046_v16  ;;  %1785 = vmatprep.subr.bf16.mxu0 %v6047_v17  ;;  %v6067_v30 = vld [vmem:[%s8931_s2 + $0x204] ss:$16 sps:$4 sm:$0xff]   ;;  %v6070_v32 = vld [vmem:[%s8931_s2 + $0x200] ss:$16 sps:$4 sm:$0xff]  }
  0x1c   : > { %1826 = vmatprep.subr.bf16.mxu1 %v6049_v18  ;;  %v6071_v33 = vld [vmem:[%s8931_s2 + $0x1e4] ss:$16 sps:$4 sm:$0xff]   ;;  %v6075_v35 = vld [vmem:[%s8931_s2 + $0x1e0] ss:$16 sps:$4 sm:$0xff]  }
  0x1d   : > { %v6073_v34 = vld [vmem:[%s8931_s2 + $0x3e4] ss:$16 sps:$4 sm:$0xff]   ;;  %v6076_v36 = vld [vmem:[%s8931_s2 + $0x3e0] ss:$16 sps:$4 sm:$0xff]  }
  0x1e   : > { %1786 = vmatpush1.bf16.msra.mxu0 %v6051_v19  ;;  %v6077_v37 = vld [vmem:[%s8931_s2 + $0x1c4] ss:$16 sps:$4 sm:$0xff]   ;;  %v6081_v39 = vld [vmem:[%s8931_s2 + $0x1c0] ss:$16 sps:$4 sm:$0xff]   ;;  %v6128_v19 = vld [vmem:[%s8931_s2 + $0xe8] ss:$16 sps:$4 sm:$0xff]  }
  0x1f   : > { %1827 = vmatpush1.bf16.msra.mxu1 %v6052_v20  ;;  %1787 = vmatprep.subr.bf16.mxu0 %v6053_v21  ;;  %v6079_v38 = vld [vmem:[%s8931_s2 + $0x3c4] ss:$16 sps:$4 sm:$0xff]   ;;  %v6082_v40 = vld [vmem:[%s8931_s2 + $0x3c0] ss:$16 sps:$4 sm:$0xff]  }
  0x20   : > { %1828 = vmatprep.subr.bf16.mxu1 %v6055_v22  ;;  %v6083_v41 = vld [vmem:[%s8931_s2 + $0x1a4] ss:$16 sps:$4 sm:$0xff]   ;;  %v6087_v43 = vld [vmem:[%s8931_s2 + $0x1a0] ss:$16 sps:$4 sm:$0xff]   ;;  %v6136_v22 = vld [vmem:[%s8931_s2 + $0xcc] ss:$16 sps:$4 sm:$0xff]  }
  0x21   : > { %v6085_v42 = vld [vmem:[%s8931_s2 + $0x3a4] ss:$16 sps:$4 sm:$0xff]   ;;  %v6088_v44 = vld [vmem:[%s8931_s2 + $0x3a0] ss:$16 sps:$4 sm:$0xff]  }
  0x22   : > { %1788 = vmatpush1.bf16.msra.mxu0 %v6057_v23  ;;  %v6089_v45 = vld [vmem:[%s8931_s2 + $0x184] ss:$16 sps:$4 sm:$0xff]   ;;  %v6093_v48 = vld [vmem:[%s8931_s2 + $0x180] ss:$16 sps:$4 sm:$0xff]  }
  0x23   : > { %1829 = vmatpush1.bf16.msra.mxu1 %v6058_v24  ;;  %1789 = vmatprep.subr.bf16.mxu0 %v6059_v25  ;;  %v6091_v46 = vld [vmem:[%s8931_s2 + $0x384] ss:$16 sps:$4 sm:$0xff]   ;;  %v6094_v49 = vld [vmem:[%s8931_s2 + $0x380] ss:$16 sps:$4 sm:$0xff]   ;;  %v6134_v24 = vld [vmem:[%s8931_s2 + $0xc8] ss:$16 sps:$4 sm:$0xff]  }
  0x24   : > { %1830 = vmatprep.subr.bf16.mxu1 %v6061_v26  ;;  %v6095_v52 = vld [vmem:[%s8931_s2 + $0x164] ss:$16 sps:$4 sm:$0xff]   ;;  %v6099_v55 = vld [vmem:[%s8931_s2 + $0x160] ss:$16 sps:$4 sm:$0xff]   ;;  %v6142_v26 = vld [vmem:[%s8931_s2 + $0xac] ss:$16 sps:$4 sm:$0xff]  }
  0x25   : > { %v6097_v54 = vld [vmem:[%s8931_s2 + $0x364] ss:$16 sps:$4 sm:$0xff]   ;;  %v6100_v56 = vld [vmem:[%s8931_s2 + $0x360] ss:$16 sps:$4 sm:$0xff]  }
  0x26   : > { %1790 = vmatpush1.bf16.msra.mxu0 %v6063_v27  ;;  %v6101_v57 = vld [vmem:[%s8931_s2 + $0x144] ss:$16 sps:$4 sm:$0xff]   ;;  %v6105_v59 = vld [vmem:[%s8931_s2 + $0x140] ss:$16 sps:$4 sm:$0xff]  }
  0x27   : > { %1831 = vmatpush1.bf16.msra.mxu1 %v6064_v28  ;;  %1791 = vmatprep.subr.bf16.mxu0 %v6065_v29  ;;  %v6103_v58 = vld [vmem:[%s8931_s2 + $0x344] ss:$16 sps:$4 sm:$0xff]   ;;  %v6106_v60 = vld [vmem:[%s8931_s2 + $0x340] ss:$16 sps:$4 sm:$0xff]   ;;  %v6140_v28 = vld [vmem:[%s8931_s2 + $0xa8] ss:$16 sps:$4 sm:$0xff]  }
  0x28   : > { %1832 = vmatprep.subr.bf16.mxu1 %v6067_v30  ;;  %v6107_v61 = vld [vmem:[%s8931_s2 + $0x124] ss:$16 sps:$4 sm:$0xff]   ;;  %v6111_v63 = vld [vmem:[%s8931_s2 + $0x120] ss:$16 sps:$4 sm:$0xff]   ;;  %v6148_v30 = vld [vmem:[%s8931_s2 + $0x8c] ss:$16 sps:$4 sm:$0xff]  }
  0x29   : > { %v6109_v62 = vld [vmem:[%s8931_s2 + $0x324] ss:$16 sps:$4 sm:$0xff]   ;;  %v6112_v0 = vld [vmem:[%s8931_s2 + $0x320] ss:$16 sps:$4 sm:$0xff]  }
  0x2a   : > { %1792 = vmatpush1.bf16.msra.mxu0 %v6069_v31  ;;  %v6113_v1 = vld [vmem:[%s8931_s2 + $0x104] ss:$16 sps:$4 sm:$0xff]   ;;  %v6117_v4 = vld [vmem:[%s8931_s2 + $0x100] ss:$16 sps:$4 sm:$0xff]  }
  0x2b   : > { %1833 = vmatpush1.bf16.msra.mxu1 %v6070_v32  ;;  %1793 = vmatprep.subr.bf16.mxu0 %v6071_v33  ;;  %v6115_v3 = vld [vmem:[%s8931_s2 + $0x304] ss:$16 sps:$4 sm:$0xff]   ;;  %v6118_v5 = vld [vmem:[%s8931_s2 + $0x300] ss:$16 sps:$4 sm:$0xff]   ;;  %v6146_v32 = vld [vmem:[%s8931_s2 + $0x88] ss:$16 sps:$4 sm:$0xff]  }
  0x2c   : > { %1834 = vmatprep.subr.bf16.mxu1 %v6073_v34  ;;  %v561_v6 = vld [vmem:[%s7155_s25] sm:$0xff]  ;;  %v563_v7 = vld [vmem:[%s7155_s25 + $0x10] sm:$0xff]  ;;  %v6154_v34 = vld [vmem:[%s8931_s2 + $0x6c] ss:$16 sps:$4 sm:$0xff]  }
  0x2d   : > { %v6121_v8 = vld [vmem:[%s8931_s2 + $0x4e4] ss:$16 sps:$4 sm:$0xff]   ;;  %v7233_v10 = vpack.c.bf16 %v561_v6, %v561_v6  ;;  %v7235_v11 = vpack.c.bf16 %v563_v7, %v563_v7  ;;  %v6119_v12 = vld [vmem:[%s8931_s2 + $0x4e0] ss:$16 sps:$4 sm:$0xff]   ;;  %v6202_v6 = vld [vmem:[%s8931_s2 + $0x16c] ss:$16 sps:$4 sm:$0xff]  }
  0x2e   : > { %1794 = vmatpush2.bf16.msra.mxu0 %v6075_v35  ;;  %v6124_v9 = vld [vmem:[%s8931_s2 + $0x604] ss:$16 sps:$4 sm:$0xff]   ;;  %v6122_v13 = vld [vmem:[%s8931_s2 + $0x600] ss:$16 sps:$4 sm:$0xff]  }
  0x2f   : > { %1835 = vmatpush2.bf16.msra.mxu1 %v6076_v36  ;;  %1795 = vmatprep.subr.bf16.mxu0 %v6077_v37  ;;  %v6127_v14 = vld [vmem:[%s8931_s2 + $0x4c4] ss:$16 sps:$4 sm:$0xff]   ;;  %v6125_v16 = vld [vmem:[%s8931_s2 + $0x4c0] ss:$16 sps:$4 sm:$0xff]   ;;  %v566_v36 = vld [vmem:[%s7155_s25 + $0x28] sm:$0xff] }
  0x30   : > { %1836 = vmatprep.subr.bf16.mxu1 %v6079_v38  ;;  %v567_v17 = vld [vmem:[%s7155_s25 + $0x30] sm:$0xff]  ;;  %v7313_v37 = vpack.c.bf16 %v566_v36, %v566_v36  ;;  %v6152_v38 = vld [vmem:[%s8931_s2 + $0x68] ss:$16 sps:$4 sm:$0xff]  }
  0x31   : > { %v6133_v18 = vld [vmem:[%s8931_s2 + $0x4a4] ss:$16 sps:$4 sm:$0xff]   ;;  %v7262_v20 = vpack.c.bf16 %v567_v17, %v567_v17  ;;  %v6131_v21 = vld [vmem:[%s8931_s2 + $0x4a0] ss:$16 sps:$4 sm:$0xff]   ;;  %v6236_v36 = vld [vmem:[%s8931_s2 + $0x4a8] ss:$16 sps:$4 sm:$0xff]  }
  0x32   : > { %1796 = vmatpush2.bf16.msra.mxu0 %v6081_v39  ;;  %v6139_v23 = vld [vmem:[%s8931_s2 + $0x484] ss:$16 sps:$4 sm:$0xff]   ;;  %v6137_v25 = vld [vmem:[%s8931_s2 + $0x480] ss:$16 sps:$4 sm:$0xff]  }
  0x33   : > { %1837 = vmatpush2.bf16.msra.mxu1 %v6082_v40  ;;  %1797 = vmatprep.subr.bf16.mxu0 %v6083_v41  ;;  %v6145_v27 = vld [vmem:[%s8931_s2 + $0x464] ss:$16 sps:$4 sm:$0xff]   ;;  %v6143_v29 = vld [vmem:[%s8931_s2 + $0x460] ss:$16 sps:$4 sm:$0xff]   ;;  %v6160_v40 = vld [vmem:[%s8931_s2 + $0x4c] ss:$16 sps:$4 sm:$0xff]  }
  0x34   : > { %1838 = vmatprep.subr.bf16.mxu1 %v6085_v42  ;;  %v6151_v31 = vld [vmem:[%s8931_s2 + $0x444] ss:$16 sps:$4 sm:$0xff]   ;;  %v6149_v33 = vld [vmem:[%s8931_s2 + $0x440] ss:$16 sps:$4 sm:$0xff]   ;;  %v6158_v42 = vld [vmem:[%s8931_s2 + $0x48] ss:$16 sps:$4 sm:$0xff]  }
  0x35   : > { %v6157_v35 = vld [vmem:[%s8931_s2 + $0x424] ss:$16 sps:$4 sm:$0xff]   ;;  %v6155_v39 = vld [vmem:[%s8931_s2 + $0x420] ss:$16 sps:$4 sm:$0xff]  }
  0x36   : > { %1798 = vmatpush2.bf16.msra.mxu0 %v6087_v43  ;;  %v6163_v41 = vld [vmem:[%s8931_s2 + $0x404] ss:$16 sps:$4 sm:$0xff]   ;;  %v6161_v43 = vld [vmem:[%s8931_s2 + $0x400] ss:$16 sps:$4 sm:$0xff]  }
  0x37   : > { %1839 = vmatpush2.bf16.msra.mxu1 %v6088_v44  ;;  %1799 = vmatprep.subr.bf16.mxu0 %v6089_v45  ;;  %v6166_v44 = vld [vmem:[%s8931_s2 + $0x2c] ss:$16 sps:$4 sm:$0xff]   ;;  %v6169_v45 = vld [vmem:[%s8931_s2 + $0x5e4] ss:$16 sps:$4 sm:$0xff]   ;;  %v6167_v47 = vld [vmem:[%s8931_s2 + $0x5e0] ss:$16 sps:$4 sm:$0xff]  }
  0x38   : > { %1840 = vmatprep.subr.bf16.mxu1 %v6091_v46  ;;  %v6164_v46 = vld [vmem:[%s8931_s2 + $0x28] ss:$16 sps:$4 sm:$0xff]   ;;  %v6173_v51 = vld [vmem:[%s8931_s2 + $0x5c0] ss:$16 sps:$4 sm:$0xff]   ;;  %v6205_v7 = vld [vmem:[%s8931_s2 + $0x524] ss:$16 sps:$4 sm:$0xff]  }
  0x39   : > { %v565_v17 = vld [vmem:[%s7155_s25 + $0x20] sm:$0xff] }
  0x3a   : > { %1800 = vmatpush2.bf16.msra.mxu0 %v6093_v48  ;;  %v6172_v48 = vld [vmem:[%s8931_s2 + $0xc] ss:$16 sps:$4 sm:$0xff]  }
  0x3b   : > { %1841 = vmatpush2.bf16.msra.mxu1 %v6094_v49  ;;  %1801 = vmatprep.subr.bf16.mxu0 %v6095_v52  ;;  %v6175_v49 = vld [vmem:[%s8931_s2 + $0x5c4] ss:$16 sps:$4 sm:$0xff]   ;;  %v6178_v52 = vld [vmem:[%s8931_s2 + $0x1ec] ss:$16 sps:$4 sm:$0xff]  }
  0x3c   : > { %1842 = vmatprep.subr.bf16.mxu1 %v6097_v54  ;;  %v6181_v54 = vld [vmem:[%s8931_s2 + $0x5a4] ss:$16 sps:$4 sm:$0xff]  }
  0x3e   : > { %1802 = vmatpush2.bf16.msra.mxu0 %v6099_v55  ;;  %v6176_v55 = vld [vmem:[%s8931_s2 + $0x1e8] ss:$16 sps:$4 sm:$0xff]  }
  0x3f   : > { %1843 = vmatpush2.bf16.msra.mxu1 %v6100_v56  ;;  %1803 = vmatprep.subr.bf16.mxu0 %v6101_v57  ;;  %v6179_v56 = vld [vmem:[%s8931_s2 + $0x5a0] ss:$16 sps:$4 sm:$0xff]   ;;  %v6184_v57 = vld [vmem:[%s8931_s2 + $0x1cc] ss:$16 sps:$4 sm:$0xff]  }
  0x40   : > { %1844 = vmatprep.subr.bf16.mxu1 %v6103_v58  ;;  %v6187_v58 = vld [vmem:[%s8931_s2 + $0x584] ss:$16 sps:$4 sm:$0xff]  }
  0x42   : > { %1804 = vmatpush2.bf16.msra.mxu0 %v6105_v59  ;;  %v6182_v59 = vld [vmem:[%s8931_s2 + $0x1c8] ss:$16 sps:$4 sm:$0xff]  }
  0x43   : > { %1845 = vmatpush2.bf16.msra.mxu1 %v6106_v60  ;;  %1805 = vmatprep.subr.bf16.mxu0 %v6107_v61  ;;  %v6185_v60 = vld [vmem:[%s8931_s2 + $0x580] ss:$16 sps:$4 sm:$0xff]   ;;  %v6190_v61 = vld [vmem:[%s8931_s2 + $0x1ac] ss:$16 sps:$4 sm:$0xff]  }
  0x44   : > { %1846 = vmatprep.subr.bf16.mxu1 %v6109_v62  ;;  %v6193_v62 = vld [vmem:[%s8931_s2 + $0x564] ss:$16 sps:$4 sm:$0xff]  }
  0x46   : > { %1806 = vmatpush2.bf16.msra.mxu0 %v6111_v63  ;;  %v6188_v63 = vld [vmem:[%s8931_s2 + $0x1a8] ss:$16 sps:$4 sm:$0xff]  }
  0x47   : > { %1847 = vmatpush2.bf16.msra.mxu1 %v6112_v0  ;;  %1807 = vmatprep.subr.bf16.mxu0 %v6113_v1  ;;  %v6191_v0 = vld [vmem:[%s8931_s2 + $0x560] ss:$16 sps:$4 sm:$0xff]   ;;  %v6196_v1 = vld [vmem:[%s8931_s2 + $0x18c] ss:$16 sps:$4 sm:$0xff]  }
  0x48   : > { %1848 = vmatprep.subr.bf16.mxu1 %v6115_v3  ;;  %v6199_v3 = vld [vmem:[%s8931_s2 + $0x544] ss:$16 sps:$4 sm:$0xff]  }
  0x4a   : > { %1808 = vmatpush2.bf16.msra.mxu0 %v6117_v4  ;;  %v6194_v4 = vld [vmem:[%s8931_s2 + $0x188] ss:$16 sps:$4 sm:$0xff]  }
  0x4b   : > { %1849 = vmatpush2.bf16.msra.mxu1 %v6118_v5  ;;  %1859 = vmatprep.subr.bf16.mxu0 %v6121_v8  ;;  %v6197_v5 = vld [vmem:[%s8931_s2 + $0x540] ss:$16 sps:$4 sm:$0xff]   ;;  %v6200_v8 = vld [vmem:[%s8931_s2 + $0x168] ss:$16 sps:$4 sm:$0xff]  }
  0x4c   : > { %1914 = vmatprep.subr.bf16.mxu1 %v6124_v9  ;;  %v6203_v9 = vld [vmem:[%s8931_s2 + $0x520] ss:$16 sps:$4 sm:$0xff]  }
  0x4d   : > { %1810 = vmatmul.mubr.bf16.vlgmr.msra.gmra.mxu0 %v7233_v10 }
  0x4e   : > { %1851 = vmatmul.mubr.bf16.vlgmr.msra.gmra.mxu1 %v7235_v11  ;;  %1860 = vmatpush1.bf16.msra.mxu0 %v6119_v12  ;;  %v6208_v12 = vld [vmem:[%s8931_s2 + $0x14c] ss:$16 sps:$4 sm:$0xff]  }
  0x4f   : > { %1915 = vmatpush1.bf16.msra.mxu1 %v6122_v13  ;;  %1861 = vmatprep.subr.bf16.mxu0 %v6127_v14  ;;  %v6211_v13 = vld [vmem:[%s8931_s2 + $0x504] ss:$16 sps:$4 sm:$0xff]   ;;  %v6206_v14 = vld [vmem:[%s8931_s2 + $0x148] ss:$16 sps:$4 sm:$0xff]  }
  0x50   : > { %1932 = vmatprep.mubr.bf16.mxu1 %v6915_v2  ;;  %1941 = vmatprep.subr.bf16.mxu1 %v6130_v15  ;;  %v6209_v15 = vld [vmem:[%s8931_s2 + $0x500] ss:$16 sps:$4 sm:$0xff]  }
  0x51   : > { %1891 = vmatprep.mubr.bf16.mxu0 %v7313_v37 }
  0x52   : > { %1862 = vmatpush1.bf16.msra.mxu0 %v6125_v16  ;;  %v6214_v16 = vld [vmem:[%s8931_s2 + $0x12c] ss:$16 sps:$4 sm:$0xff]  }
  0x53   : > { %1863 = vmatprep.subr.bf16.mxu0 %v6133_v18  ;;  %v6217_v18 = vld [vmem:[%s8931_s2 + $0x2ec] ss:$16 sps:$4 sm:$0xff]  }
  0x56   : > { %5571 = vmatmul.mubr.msk.bf16.vlgmr.msra.gmra.mxu1 %vm1773_vm0, %v7262_v20  ;;  %1864 = vmatpush1.bf16.msra.mxu0 %v6131_v21  ;;  %v7440_v21 = vpack.c.bf16 %v565_v17, %v565_v17  ;;  %v6304_v17 = vld [vmem:[%s8931_s2 + $0x54c] ss:$16 sps:$4 sm:$0xff]  }
  0x57   : > { %1942 = vmatpush1.bf16.msra.mxu1 %v6128_v19  ;;  %1865 = vmatprep.subr.bf16.mxu0 %v6139_v23  ;;  %v6212_v19 = vld [vmem:[%s8931_s2 + $0x128] ss:$16 sps:$4 sm:$0xff]   ;;  %v6220_v23 = vld [vmem:[%s8931_s2 + $0x10c] ss:$16 sps:$4 sm:$0xff]  }
  0x58   : > { %1943 = vmatprep.subr.bf16.mxu1 %v6136_v22  ;;  %1973 = vmatprep.mubr.bf16.mxu1 %v7170_v50  ;;  %v6170_v50 = vld [vmem:[%s8931_s2 + $0x8] ss:$16 sps:$4 sm:$0xff]  }
  0x59   : > { %v6215_v22 = vld [vmem:[%s8931_s2 + $0x2e8] ss:$16 sps:$4 sm:$0xff]  }
  0x5a   : > { %1866 = vmatpush1.bf16.msra.mxu0 %v6137_v25  ;;  %v6218_v25 = vld [vmem:[%s8931_s2 + $0x108] ss:$16 sps:$4 sm:$0xff]  }
  0x5b   : > { %1944 = vmatpush1.bf16.msra.mxu1 %v6134_v24  ;;  %1867 = vmatprep.subr.bf16.mxu0 %v6145_v27  ;;  %v6223_v24 = vld [vmem:[%s8931_s2 + $0x2cc] ss:$16 sps:$4 sm:$0xff]  }
  0x5c   : > { %1945 = vmatprep.subr.bf16.mxu1 %v6142_v26  ;;  %v6221_v26 = vld [vmem:[%s8931_s2 + $0x2c8] ss:$16 sps:$4 sm:$0xff]   ;;  %v6226_v27 = vld [vmem:[%s8931_s2 + $0x4ec] ss:$16 sps:$4 sm:$0xff]  }
  0x5e   : > { %1868 = vmatpush1.bf16.msra.mxu0 %v6143_v29  ;;  %v6224_v29 = vld [vmem:[%s8931_s2 + $0x4e8] ss:$16 sps:$4 sm:$0xff]  }
  0x5f   : > { %1946 = vmatpush1.bf16.msra.mxu1 %v6140_v28  ;;  %1869 = vmatprep.subr.bf16.mxu0 %v6151_v31  ;;  %v6229_v28 = vld [vmem:[%s8931_s2 + $0x2ac] ss:$16 sps:$4 sm:$0xff]  }
  0x60   : > { %1947 = vmatprep.subr.bf16.mxu1 %v6148_v30  ;;  %v6227_v30 = vld [vmem:[%s8931_s2 + $0x2a8] ss:$16 sps:$4 sm:$0xff]   ;;  %v6232_v31 = vld [vmem:[%s8931_s2 + $0x4cc] ss:$16 sps:$4 sm:$0xff]  }
  0x62   : > { %1870 = vmatpush1.bf16.msra.mxu0 %v6149_v33  ;;  %v6230_v33 = vld [vmem:[%s8931_s2 + $0x4c8] ss:$16 sps:$4 sm:$0xff]  }
  0x63   : > { %1948 = vmatpush1.bf16.msra.mxu1 %v6146_v32  ;;  %1871 = vmatprep.subr.bf16.mxu0 %v6157_v35  ;;  %v6235_v32 = vld [vmem:[%s8931_s2 + $0x28c] ss:$16 sps:$4 sm:$0xff]  }
  0x64   : > { %1949 = vmatprep.subr.bf16.mxu1 %v6154_v34  ;;  %v6238_v34 = vld [vmem:[%s8931_s2 + $0x4ac] ss:$16 sps:$4 sm:$0xff]  }
  0x65   : > { %v6241_v35 = vld [vmem:[%s8931_s2 + $0x26c] ss:$16 sps:$4 sm:$0xff]  }
  0x66   : > { %1872 = vmatpush1.bf16.msra.mxu0 %v6155_v39  ;;  %v6247_v39 = vld [vmem:[%s8931_s2 + $0x24c] ss:$16 sps:$4 sm:$0xff]  }
  0x67   : > { %1950 = vmatpush1.bf16.msra.mxu1 %v6152_v38  ;;  %1873 = vmatprep.subr.bf16.mxu0 %v6163_v41  ;;  %v6244_v38 = vld [vmem:[%s8931_s2 + $0x48c] ss:$16 sps:$4 sm:$0xff]  }
  0x68   : > { %1951 = vmatprep.subr.bf16.mxu1 %v6160_v40  ;;  %v6245_v40 = vld [vmem:[%s8931_s2 + $0x248] ss:$16 sps:$4 sm:$0xff]   ;;  %v6250_v41 = vld [vmem:[%s8931_s2 + $0x46c] ss:$16 sps:$4 sm:$0xff]  }
  0x6a   : > { %1874 = vmatpush1.bf16.msra.mxu0 %v6161_v43  ;;  %v6248_v43 = vld [vmem:[%s8931_s2 + $0x468] ss:$16 sps:$4 sm:$0xff]  }
  0x6b   : > { %1952 = vmatpush1.bf16.msra.mxu1 %v6158_v42  ;;  %1875 = vmatprep.subr.bf16.mxu0 %v6169_v45  ;;  %v6253_v42 = vld [vmem:[%s8931_s2 + $0x22c] ss:$16 sps:$4 sm:$0xff]  }
  0x6c   : > { %1953 = vmatprep.subr.bf16.mxu1 %v6166_v44  ;;  %v6251_v44 = vld [vmem:[%s8931_s2 + $0x228] ss:$16 sps:$4 sm:$0xff]   ;;  %v6256_v45 = vld [vmem:[%s8931_s2 + $0x44c] ss:$16 sps:$4 sm:$0xff]  }
  0x6e   : > { %1876 = vmatpush2.bf16.msra.mxu0 %v6167_v47  ;;  %v6254_v47 = vld [vmem:[%s8931_s2 + $0x448] ss:$16 sps:$4 sm:$0xff]  }
  0x6f   : > { %1954 = vmatpush1.bf16.msra.mxu1 %v6164_v46  ;;  %1877 = vmatprep.subr.bf16.mxu0 %v6175_v49  ;;  %v6259_v46 = vld [vmem:[%s8931_s2 + $0x20c] ss:$16 sps:$4 sm:$0xff]  }
  0x70   : > { %1955 = vmatprep.subr.bf16.mxu1 %v6172_v48  ;;  %v6257_v48 = vld [vmem:[%s8931_s2 + $0x208] ss:$16 sps:$4 sm:$0xff]   ;;  %v6262_v49 = vld [vmem:[%s8931_s2 + $0x42c] ss:$16 sps:$4 sm:$0xff]  }
  0x72   : > { %1878 = vmatpush2.bf16.msra.mxu0 %v6173_v51  ;;  %v6260_v51 = vld [vmem:[%s8931_s2 + $0x428] ss:$16 sps:$4 sm:$0xff]  }
  0x73   : > { %1956 = vmatpush1.bf16.msra.mxu1 %v6170_v50  ;;  %1879 = vmatprep.subr.bf16.mxu0 %v6181_v54  ;;  %v6265_v50 = vld [vmem:[%s8931_s2 + $0x3ec] ss:$16 sps:$4 sm:$0xff]  }
  0x74   : > { %1957 = vmatprep.subr.bf16.mxu1 %v6178_v52  ;;  %v6263_v52 = vld [vmem:[%s8931_s2 + $0x3e8] ss:$16 sps:$4 sm:$0xff]   ;;  %v6268_v54 = vld [vmem:[%s8931_s2 + $0x40c] ss:$16 sps:$4 sm:$0xff]  }
  0x76   : > { %1880 = vmatpush2.bf16.msra.mxu0 %v6179_v56  ;;  %v6266_v56 = vld [vmem:[%s8931_s2 + $0x408] ss:$16 sps:$4 sm:$0xff]  }
  0x77   : > { %1958 = vmatpush2.bf16.msra.mxu1 %v6176_v55  ;;  %1881 = vmatprep.subr.bf16.mxu0 %v6187_v58  ;;  %v6271_v55 = vld [vmem:[%s8931_s2 + $0x3cc] ss:$16 sps:$4 sm:$0xff]  }
  0x78   : > { %1959 = vmatprep.subr.bf16.mxu1 %v6184_v57  ;;  %v6269_v57 = vld [vmem:[%s8931_s2 + $0x3c8] ss:$16 sps:$4 sm:$0xff]   ;;  %v6274_v58 = vld [vmem:[%s8931_s2 + $0x5ec] ss:$16 sps:$4 sm:$0xff]  }
  0x7a   : > { %1882 = vmatpush2.bf16.msra.mxu0 %v6185_v60  ;;  %v6272_v60 = vld [vmem:[%s8931_s2 + $0x5e8] ss:$16 sps:$4 sm:$0xff]  }
  0x7b   : > { %1960 = vmatpush2.bf16.msra.mxu1 %v6182_v59  ;;  %1883 = vmatprep.subr.bf16.mxu0 %v6193_v62  ;;  %v6277_v59 = vld [vmem:[%s8931_s2 + $0x3ac] ss:$16 sps:$4 sm:$0xff]  }
  0x7c   : > { %1961 = vmatprep.subr.bf16.mxu1 %v6190_v61  ;;  %v6275_v61 = vld [vmem:[%s8931_s2 + $0x3a8] ss:$16 sps:$4 sm:$0xff]   ;;  %v6280_v62 = vld [vmem:[%s8931_s2 + $0x5cc] ss:$16 sps:$4 sm:$0xff]  }
  0x7e   : > { %1884 = vmatpush2.bf16.msra.mxu0 %v6191_v0  ;;  %v6278_v0 = vld [vmem:[%s8931_s2 + $0x5c8] ss:$16 sps:$4 sm:$0xff]  }
  0x7f   : > { %1962 = vmatpush2.bf16.msra.mxu1 %v6188_v63  ;;  %1885 = vmatprep.subr.bf16.mxu0 %v6199_v3  ;;  %v6283_v63 = vld [vmem:[%s8931_s2 + $0x38c] ss:$16 sps:$4 sm:$0xff]  }
  0x80   : > { %1963 = vmatprep.subr.bf16.mxu1 %v6196_v1  ;;  %v6281_v1 = vld [vmem:[%s8931_s2 + $0x388] ss:$16 sps:$4 sm:$0xff]   ;;  %v6286_v3 = vld [vmem:[%s8931_s2 + $0x5ac] ss:$16 sps:$4 sm:$0xff]  }
  0x82   : > { %1886 = vmatpush2.bf16.msra.mxu0 %v6197_v5  ;;  %v6284_v5 = vld [vmem:[%s8931_s2 + $0x5a8] ss:$16 sps:$4 sm:$0xff]  }
  0x83   : > { %1964 = vmatpush2.bf16.msra.mxu1 %v6194_v4  ;;  %1887 = vmatprep.subr.bf16.mxu0 %v6205_v7  ;;  %v6289_v4 = vld [vmem:[%s8931_s2 + $0x36c] ss:$16 sps:$4 sm:$0xff]  }
  0x84   : > { %1965 = vmatprep.subr.bf16.mxu1 %v6202_v6  ;;  %v6287_v6 = vld [vmem:[%s8931_s2 + $0x368] ss:$16 sps:$4 sm:$0xff]   ;;  %v6292_v7 = vld [vmem:[%s8931_s2 + $0x58c] ss:$16 sps:$4 sm:$0xff]  }
  0x86   : > { %1888 = vmatpush2.bf16.msra.mxu0 %v6203_v9  ;;  %v6290_v9 = vld [vmem:[%s8931_s2 + $0x588] ss:$16 sps:$4 sm:$0xff]  }
  0x87   : > { %1966 = vmatpush2.bf16.msra.mxu1 %v6200_v8  ;;  %1889 = vmatprep.subr.bf16.mxu0 %v6211_v13  ;;  %v6295_v8 = vld [vmem:[%s8931_s2 + $0x34c] ss:$16 sps:$4 sm:$0xff]  }
  0x88   : > { %1967 = vmatprep.subr.bf16.mxu1 %v6208_v12  ;;  %v6293_v12 = vld [vmem:[%s8931_s2 + $0x348] ss:$16 sps:$4 sm:$0xff]   ;;  %v6298_v13 = vld [vmem:[%s8931_s2 + $0x56c] ss:$16 sps:$4 sm:$0xff]  }
  0x8a   : > { %1890 = vmatpush2.bf16.msra.mxu0 %v6209_v15  ;;  %v6296_v15 = vld [vmem:[%s8931_s2 + $0x568] ss:$16 sps:$4 sm:$0xff]  }
  0x8b   : > { %1968 = vmatpush2.bf16.msra.mxu1 %v6206_v14  ;;  %1982 = vmatprep.subr.bf16.mxu0 %v6217_v18  ;;  %v6301_v14 = vld [vmem:[%s8931_s2 + $0x32c] ss:$16 sps:$4 sm:$0xff]  }
  0x8c   : > { %1969 = vmatprep.subr.bf16.mxu1 %v6214_v16  ;;  %v6299_v16 = vld [vmem:[%s8931_s2 + $0x328] ss:$16 sps:$4 sm:$0xff]   ;;  %v6307_v18 = vld [vmem:[%s8931_s2 + $0x30c] ss:$16 sps:$4 sm:$0xff]  }
  0x8d   : > { %1892 = vmatmul.mubr.bf16.vlgmr.msra.gmra.mxu0 %v7440_v21 }
  0x8e   : > { %1983 = vmatpush1.bf16.msra.mxu0 %v6215_v22  ;;  %2014 = vmatprep.mubr.bf16.mxu0 %v7176_v53  ;;  %v6233_v53 = vld [vmem:[%s8931_s2 + $0x288] ss:$16 sps:$4 sm:$0xff]  }
  0x8f   : > { %1970 = vmatpush2.bf16.msra.mxu1 %v6212_v19  ;;  %1984 = vmatprep.subr.bf16.mxu0 %v6223_v24  ;;  %v6302_v19 = vld [vmem:[%s8931_s2 + $0x548] ss:$16 sps:$4 sm:$0xff]   ;;  %v6313_v24 = vld [vmem:[%s8931_s2 + $0x60c] ss:$16 sps:$4 sm:$0xff]  }
  0x90   : > { %1971 = vmatprep.subr.bf16.mxu1 %v6220_v23  ;;  %v6305_v22 = vld [vmem:[%s8931_s2 + $0x308] ss:$16 sps:$4 sm:$0xff]   ;;  %v6310_v23 = vld [vmem:[%s8931_s2 + $0x52c] ss:$16 sps:$4 sm:$0xff]  }
  0x92   : > { %1985 = vmatpush1.bf16.msra.mxu0 %v6221_v26  ;;  %v6311_v26 = vld [vmem:[%s8931_s2 + $0x608] ss:$16 sps:$4 sm:$0xff]  }
  0x93   : > { %1972 = vmatpush2.bf16.msra.mxu1 %v6218_v25  ;;  %1986 = vmatprep.subr.bf16.mxu0 %v6229_v28  ;;  %v6308_v25 = vld [vmem:[%s8931_s2 + $0x528] ss:$16 sps:$4 sm:$0xff]   ;;  %v6319_v28 = vld [vmem:[%s8933_s4 + $0x74] ss:$8 sps:$4 sm:$0xff]  }
  0x94   : > { %2023 = vmatprep.subr.bf16.mxu1 %v6226_v27  ;;  %v6316_v27 = vld [vmem:[%s8931_s2 + $0x50c] ss:$16 sps:$4 sm:$0xff]  }
  0x96   : > { %1974 = vmatmul.mubr.bf16.vlgmr.msra.gmra.mxu1 %v7233_v10  ;;  %1987 = vmatpush1.bf16.msra.mxu0 %v6227_v30  ;;  %v6239_v10 = vld [vmem:[%s8931_s2 + $0x268] ss:$16 sps:$4 sm:$0xff]  }
  0x97   : > { %2024 = vmatpush1.bf16.msra.mxu1 %v6224_v29  ;;  %1988 = vmatprep.subr.bf16.mxu0 %v6235_v32  ;;  %v6314_v29 = vld [vmem:[%s8931_s2 + $0x508] ss:$16 sps:$4 sm:$0xff]  }
  0x98   : > { %2025 = vmatprep.subr.bf16.mxu1 %v6232_v31  ;;  %2055 = vmatprep.mubr.bf16.mxu1 %v7313_v37  ;;  %v6242_v37 = vld [vmem:[%s8931_s2 + $0x488] ss:$16 sps:$4 sm:$0xff]   ;;  %v6322_v31 = vld [vmem:[%s8933_s4 + $0x64] ss:$8 sps:$4 sm:$0xff]  }
  0x99   : > { %v6317_v30 = vld [vmem:[%s8933_s4 + $0x70] ss:$8 sps:$4 sm:$0xff]  }
  0x9a   : > { %1989 = vmatpush1.bf16.msra.mxu0 %v6233_v53  ;;  %v6323_v32 = vld [vmem:[%s8933_s4 + $0x50] ss:$8 sps:$4 sm:$0xff]   ;;  %v6370_v53 = vld [vmem:[%s8933_s4 + $0x164] ss:$8 sps:$4 sm:$0xff]  }
  0x9b   : > { %2026 = vmatpush1.bf16.msra.mxu1 %v6230_v33  ;;  %1990 = vmatprep.subr.bf16.mxu0 %v6241_v35  ;;  %v6328_v33 = vld [vmem:[%s8933_s4 + $0x44] ss:$8 sps:$4 sm:$0xff]   ;;  %v6368_v35 = vld [vmem:[%s8933_s4 + $0x160] ss:$8 sps:$4 sm:$0xff]  }
  0x9c   : > { %2027 = vmatprep.subr.bf16.mxu1 %v6238_v34  ;;  %v6326_v34 = vld [vmem:[%s8933_s4 + $0x40] ss:$8 sps:$4 sm:$0xff]  }
  0x9e   : > { %1991 = vmatpush1.bf16.msra.mxu0 %v6239_v10  ;;  %v6373_v10 = vld [vmem:[%s8933_s4 + $0x154] ss:$8 sps:$4 sm:$0xff]  }
  0x9f   : > { %2028 = vmatpush1.bf16.msra.mxu1 %v6236_v36  ;;  %1992 = vmatprep.subr.bf16.mxu0 %v6247_v39  ;;  %v6331_v36 = vld [vmem:[%s8933_s4 + $0x34] ss:$8 sps:$4 sm:$0xff]   ;;  %v6334_v39 = vld [vmem:[%s8933_s4 + $0x24] ss:$8 sps:$4 sm:$0xff]  }
  0xa0   : > { %2029 = vmatprep.subr.bf16.mxu1 %v6244_v38  ;;  %v6329_v38 = vld [vmem:[%s8933_s4 + $0x30] ss:$8 sps:$4 sm:$0xff]  }
  0xa2   : > { %1993 = vmatpush1.bf16.msra.mxu0 %v6245_v40  ;;  %v6376_v40 = vld [vmem:[%s8933_s4 + $0x144] ss:$8 sps:$4 sm:$0xff]  }
  0xa3   : > { %2030 = vmatpush1.bf16.msra.mxu1 %v6242_v37  ;;  %1994 = vmatprep.subr.bf16.mxu0 %v6253_v42  ;;  %v6371_v37 = vld [vmem:[%s8933_s4 + $0x150] ss:$8 sps:$4 sm:$0xff]   ;;  %v6374_v42 = vld [vmem:[%s8933_s4 + $0x140] ss:$8 sps:$4 sm:$0xff]  }
  0xa4   : > { %2031 = vmatprep.subr.bf16.mxu1 %v6250_v41  ;;  %v6332_v41 = vld [vmem:[%s8933_s4 + $0x20] ss:$8 sps:$4 sm:$0xff]  }
  0xa6   : > { %1995 = vmatpush1.bf16.msra.mxu0 %v6251_v44  ;;  %v6379_v44 = vld [vmem:[%s8933_s4 + $0x134] ss:$8 sps:$4 sm:$0xff]  }
  0xa7   : > { %2032 = vmatpush1.bf16.msra.mxu1 %v6248_v43  ;;  %1996 = vmatprep.subr.bf16.mxu0 %v6259_v46  ;;  %v6337_v43 = vld [vmem:[%s8933_s4 + $0x14] ss:$8 sps:$4 sm:$0xff]   ;;  %v6377_v46 = vld [vmem:[%s8933_s4 + $0x130] ss:$8 sps:$4 sm:$0xff]  }
  0xa8   : > { %2033 = vmatprep.subr.bf16.mxu1 %v6256_v45  ;;  %v6335_v45 = vld [vmem:[%s8933_s4 + $0x10] ss:$8 sps:$4 sm:$0xff]  }
  0xaa   : > { %1997 = vmatpush1.bf16.msra.mxu0 %v6257_v48  ;;  %v6382_v48 = vld [vmem:[%s8933_s4 + $0x124] ss:$8 sps:$4 sm:$0xff]  }
  0xab   : > { %2034 = vmatpush1.bf16.msra.mxu1 %v6254_v47  ;;  %1998 = vmatprep.subr.bf16.mxu0 %v6265_v50  ;;  %v6340_v47 = vld [vmem:[%s8933_s4 + $0x4] ss:$8 sps:$4 sm:$0xff]   ;;  %v6380_v50 = vld [vmem:[%s8933_s4 + $0x120] ss:$8 sps:$4 sm:$0xff]  }
  0xac   : > { %2035 = vmatprep.subr.bf16.mxu1 %v6262_v49  ;;  %v6338_v49 = vld [vmem:[%s8933_s4] ss:$8 sps:$4 sm:$0xff]  }
  0xae   : > { %1999 = vmatpush2.bf16.msra.mxu0 %v6263_v52  ;;  %v6385_v52 = vld [vmem:[%s8933_s4 + $0x114] ss:$8 sps:$4 sm:$0xff]  }
  0xaf   : > { %2036 = vmatpush1.bf16.msra.mxu1 %v6260_v51  ;;  %2000 = vmatprep.subr.bf16.mxu0 %v6271_v55  ;;  %v6343_v51 = vld [vmem:[%s8933_s4 + $0xf4] ss:$8 sps:$4 sm:$0xff]   ;;  %v6383_v55 = vld [vmem:[%s8933_s4 + $0x110] ss:$8 sps:$4 sm:$0xff]  }
  0xb0   : > { %2037 = vmatprep.subr.bf16.mxu1 %v6268_v54  ;;  %v6341_v54 = vld [vmem:[%s8933_s4 + $0xf0] ss:$8 sps:$4 sm:$0xff]  }
  0xb2   : > { %2001 = vmatpush2.bf16.msra.mxu0 %v6269_v57  ;;  %v6388_v57 = vld [vmem:[%s8933_s4 + $0x104] ss:$8 sps:$4 sm:$0xff]  }
  0xb3   : > { %2038 = vmatpush1.bf16.msra.mxu1 %v6266_v56  ;;  %2002 = vmatprep.subr.bf16.mxu0 %v6277_v59  ;;  %v6346_v56 = vld [vmem:[%s8933_s4 + $0xe4] ss:$8 sps:$4 sm:$0xff]   ;;  %v6386_v59 = vld [vmem:[%s8933_s4 + $0x100] ss:$8 sps:$4 sm:$0xff]  }
  0xb4   : > { %2039 = vmatprep.subr.bf16.mxu1 %v6274_v58  ;;  %v6344_v58 = vld [vmem:[%s8933_s4 + $0xe0] ss:$8 sps:$4 sm:$0xff]  }
  0xb6   : > { %2003 = vmatpush2.bf16.msra.mxu0 %v6275_v61  ;;  %v6391_v61 = vld [vmem:[%s8933_s4 + $0x1f4] ss:$8 sps:$4 sm:$0xff]  }
  0xb7   : > { %2040 = vmatpush2.bf16.msra.mxu1 %v6272_v60  ;;  %2004 = vmatprep.subr.bf16.mxu0 %v6283_v63  ;;  %v6349_v60 = vld [vmem:[%s8933_s4 + $0xd4] ss:$8 sps:$4 sm:$0xff]   ;;  %v6389_v63 = vld [vmem:[%s8933_s4 + $0x1f0] ss:$8 sps:$4 sm:$0xff]  }
  0xb8   : > { %2041 = vmatprep.subr.bf16.mxu1 %v6280_v62  ;;  %v6347_v62 = vld [vmem:[%s8933_s4 + $0xd0] ss:$8 sps:$4 sm:$0xff]  }
  0xba   : > { %2005 = vmatpush2.bf16.msra.mxu0 %v6281_v1  ;;  %v6394_v1 = vld [vmem:[%s8933_s4 + $0x1e4] ss:$8 sps:$4 sm:$0xff]  }
  0xbb   : > { %2042 = vmatpush2.bf16.msra.mxu1 %v6278_v0  ;;  %2006 = vmatprep.subr.bf16.mxu0 %v6289_v4  ;;  %v6352_v0 = vld [vmem:[%s8933_s4 + $0xc4] ss:$8 sps:$4 sm:$0xff]   ;;  %v6392_v4 = vld [vmem:[%s8933_s4 + $0x1e0] ss:$8 sps:$4 sm:$0xff]  }
  0xbc   : > { %2043 = vmatprep.subr.bf16.mxu1 %v6286_v3  ;;  %v6350_v3 = vld [vmem:[%s8933_s4 + $0xc0] ss:$8 sps:$4 sm:$0xff]  }
  0xbe   : > { %2007 = vmatpush2.bf16.msra.mxu0 %v6287_v6  ;;  %v6397_v6 = vld [vmem:[%s8933_s4 + $0x1d4] ss:$8 sps:$4 sm:$0xff]  }
  0xbf   : > { %2044 = vmatpush2.bf16.msra.mxu1 %v6284_v5  ;;  %2008 = vmatprep.subr.bf16.mxu0 %v6295_v8  ;;  %v6355_v5 = vld [vmem:[%s8933_s4 + $0xb4] ss:$8 sps:$4 sm:$0xff]   ;;  %v6395_v8 = vld [vmem:[%s8933_s4 + $0x1d0] ss:$8 sps:$4 sm:$0xff]  }
  0xc0   : > { %2045 = vmatprep.subr.bf16.mxu1 %v6292_v7  ;;  %v6353_v7 = vld [vmem:[%s8933_s4 + $0xb0] ss:$8 sps:$4 sm:$0xff]  }
  0xc2   : > { %2009 = vmatpush2.bf16.msra.mxu0 %v6293_v12  ;;  %v6400_v12 = vld [vmem:[%s8933_s4 + $0x1c4] ss:$8 sps:$4 sm:$0xff]  }
  0xc3   : > { %2046 = vmatpush2.bf16.msra.mxu1 %v6290_v9  ;;  %2010 = vmatprep.subr.bf16.mxu0 %v6301_v14  ;;  %v6358_v9 = vld [vmem:[%s8933_s4 + $0xa4] ss:$8 sps:$4 sm:$0xff]   ;;  %v6398_v14 = vld [vmem:[%s8933_s4 + $0x1c0] ss:$8 sps:$4 sm:$0xff]  }
  0xc4   : > { %2047 = vmatprep.subr.bf16.mxu1 %v6298_v13  ;;  %v6356_v13 = vld [vmem:[%s8933_s4 + $0xa0] ss:$8 sps:$4 sm:$0xff]  }
  0xc6   : > { %2011 = vmatpush2.bf16.msra.mxu0 %v6299_v16  ;;  %v6359_v16 = vld [vmem:[%s8933_s4 + $0x90] ss:$8 sps:$4 sm:$0xff]  }
  0xc7   : > { %2048 = vmatpush2.bf16.msra.mxu1 %v6296_v15  ;;  %2012 = vmatprep.subr.bf16.mxu0 %v6307_v18  ;;  %v6361_v15 = vld [vmem:[%s8933_s4 + $0x94] ss:$8 sps:$4 sm:$0xff]   ;;  %v6362_v18 = vld [vmem:[%s8933_s4 + $0x80] ss:$8 sps:$4 sm:$0xff]  }
  0xc8   : > { %2049 = vmatprep.subr.bf16.mxu1 %v6304_v17  ;;  %v6364_v17 = vld [vmem:[%s8933_s4 + $0x84] ss:$8 sps:$4 sm:$0xff]  }
  0xca   : > { %2013 = vmatpush2.bf16.msra.mxu0 %v6305_v22 }
  0xcb   : > { %2050 = vmatpush2.bf16.msra.mxu1 %v6302_v19  ;;  %2078 = vmatprep.subr.bf16.mxu0 %v6313_v24 }
  0xcc   : > { %2051 = vmatprep.subr.bf16.mxu1 %v6310_v23 }
  0xcd   : > { %2015 = vmatmul.mubr.bf16.vlgmr.msra.gmra.mxu0 %v7235_v11  ;;  %v6320_v11 = vld [vmem:[%s8933_s4 + $0x60] ss:$8 sps:$4 sm:$0xff]  }
  0xce   : > { %2079 = vmatpush1.bf16.msra.mxu0 %v6311_v26  ;;  %2096 = vmatprep.mubr.bf16.mxu0 %v6915_v2  ;;  %v6325_v2 = vld [vmem:[%s8933_s4 + $0x54] ss:$8 sps:$4 sm:$0xff]   ;;  %v6401_v26 = vld [vmem:[%s8933_s4 + $0x1b0] ss:$8 sps:$4 sm:$0xff]  }
  0xcf   : > { %2052 = vmatpush2.bf16.msra.mxu1 %v6308_v25  ;;  %2509 = vmatprep.subr.bf16.mxu0 %v6319_v28  ;;  %v6403_v25 = vld [vmem:[%s8933_s4 + $0x1b4] ss:$8 sps:$4 sm:$0xff]  }
  0xd0   : > { %2053 = vmatprep.subr.bf16.mxu1 %v6316_v27 }
  0xd3   : > { %2054 = vmatpush2.bf16.msra.mxu1 %v6314_v29 }
  0xd5   : > { %5572 = vmatmul.mubr.msk.bf16.vlgmr.msra.gmra.mxu0 %vm1773_vm0, %v7262_v20  ;;  %v6365_v20 = vld [vmem:[%s8933_s4 + $0x170] ss:$8 sps:$4 sm:$0xff]  }
  0xd6   : > { %2056 = vmatmul.mubr.bf16.vlgmr.msra.gmra.mxu1 %v7440_v21  ;;  %2510 = vmatpush1.bf16.msra.mxu0 %v6317_v30  ;;  %v6367_v21 = vld [vmem:[%s8933_s4 + $0x174] ss:$8 sps:$4 sm:$0xff]  }
  0xd7   : > { %2511 = vmatprep.subr.bf16.mxu0 %v6322_v31  ;;  %2550 = vmatprep.subr.bf16.mxu1 %v6367_v21  ;;  %v6406_v31 = vld [vmem:[%s8933_s4 + $0x1a4] ss:$8 sps:$4 sm:$0xff]  }
  0xd8   : > { %2551 = vmatpush1.bf16.msra.mxu1 %v6365_v20  ;;  %v6407_v20 = vld [vmem:[%s8933_s4 + $0x190] ss:$8 sps:$4 sm:$0xff]  }
  0xd9   : > { %2552 = vmatprep.subr.bf16.mxu1 %v6370_v53 }
  0xda   : > { %2512 = vmatpush1.bf16.msra.mxu0 %v6320_v11  ;;  %v6404_v11 = vld [vmem:[%s8933_s4 + $0x1a0] ss:$8 sps:$4 sm:$0xff]  }
  0xdb   : > { %2513 = vmatprep.subr.bf16.mxu0 %v6325_v2 }
  0xdc   : > { %2553 = vmatpush1.bf16.msra.mxu1 %v6368_v35  ;;  %v6410_v35 = vld [vmem:[%s8933_s4 + $0x180] ss:$8 sps:$4 sm:$0xff]  }
  0xdd   : > { %2554 = vmatprep.subr.bf16.mxu1 %v6373_v10 }
  0xde   : > { %2514 = vmatpush1.bf16.msra.mxu0 %v6323_v32 }
  0xdf   : > { %2515 = vmatprep.subr.bf16.mxu0 %v6328_v33  ;;  %v6409_v33 = vld [vmem:[%s8933_s4 + $0x194] ss:$8 sps:$4 sm:$0xff]  }
  0xe0   : > { %2555 = vmatpush1.bf16.msra.mxu1 %v6371_v37 }
  0xe1   : > { %2556 = vmatprep.subr.bf16.mxu1 %v6376_v40 }
  0xe2   : > { %2516 = vmatpush1.bf16.msra.mxu0 %v6326_v34  ;;  %v6412_v34 = vld [vmem:[%s8933_s4 + $0x184] ss:$8 sps:$4 sm:$0xff]  }
  0xe3   : > { %2517 = vmatprep.subr.bf16.mxu0 %v6331_v36  ;;  %v773_v36 = vlaneseq }
  0xe4   : > { %2557 = vmatpush1.bf16.msra.mxu1 %v6374_v42 }
  0xe5   : > { %2558 = vmatprep.subr.bf16.mxu1 %v6379_v44  ;;  %v7844_v10 = vshrl.u32 %v773_v36, 7  ;;  %v6425_v36 = vld [vmem:[%s8935_s6 + $0x30] ss:$8 sps:$4 sm:$0xff]  }
  0xe6   : > { %2518 = vmatpush1.bf16.msra.mxu0 %v6329_v38 }
  0xe7   : > { %2519 = vmatprep.subr.bf16.mxu0 %v6334_v39  ;;  %v7847_v38 = vsub.s32 0, %v7844_v10  ;;  %v771_v39 = vld [vmem:[%s8932_s3] sm:$0xf]  ;;  %v7853_v37 = vsub.s32 1, %v7844_v10 }
  0xe8   : > { %2559 = vmatpush1.bf16.msra.mxu1 %v6377_v46 }
  0xe9   : > { %2560 = vmatprep.subr.bf16.mxu1 %v6382_v48  ;;  %v776_v40 = vrot.slane %v771_v39, %v7847_v38 }
  0xea   : > { %2520 = vmatpush1.bf16.msra.mxu0 %v6332_v41  ;;  %v780_v41 = vrot.slane %v771_v39, %v7853_v37 }
  0xeb   : > { %2521 = vmatprep.subr.bf16.mxu0 %v6337_v43 }
  0xec   : > { %2561 = vmatpush1.bf16.msra.mxu1 %v6380_v50 }
  0xed   : > { %2562 = vmatprep.subr.bf16.mxu1 %v6385_v52 }
  0xee   : > { %2522 = vmatpush1.bf16.msra.mxu0 %v6335_v45 }
  0xef   : > { %2523 = vmatprep.subr.bf16.mxu0 %v6340_v47 }
  0xf0   : > { %2563 = vmatpush1.bf16.msra.mxu1 %v6383_v55 }
  0xf1   : > { %2564 = vmatprep.subr.bf16.mxu1 %v6388_v57 }
  0xf2   : > { %2524 = vmatpush1.bf16.msra.mxu0 %v6338_v49 }
  0xf3   : > { %2525 = vmatprep.subr.bf16.mxu0 %v6343_v51 }
  0xf4   : > { %2565 = vmatpush1.bf16.msra.mxu1 %v6386_v59 }
  0xf5   : > { %2566 = vmatprep.subr.bf16.mxu1 %v6391_v61 }
  0xf6   : > { %2526 = vmatpush2.bf16.msra.mxu0 %v6341_v54 }
  0xf7   : > { %2527 = vmatprep.subr.bf16.mxu0 %v6346_v56 }
  0xf8   : > { %2567 = vmatpush2.bf16.msra.mxu1 %v6389_v63  ;;  %v7858_v63 = vsub.s32 2, %v7844_v10 }
  0xf9   : > { %2568 = vmatprep.subr.bf16.mxu1 %v6394_v1 }
  0xfa   : > { %2528 = vmatpush2.bf16.msra.mxu0 %v6344_v58 }
  0xfb   : > { %2529 = vmatprep.subr.bf16.mxu0 %v6349_v60 }
  0xfc   : > { %2569 = vmatpush2.bf16.msra.mxu1 %v6392_v4 }
  0xfd   : > { %2570 = vmatprep.subr.bf16.mxu1 %v6397_v6 }
  0xfe   : > { %2530 = vmatpush2.bf16.msra.mxu0 %v6347_v62 }
  0xff   : > { %2531 = vmatprep.subr.bf16.mxu0 %v6352_v0  ;;  %v7861_v0 = vsub.s32 3, %v7844_v10 }
 0x100   : > { %2571 = vmatpush2.bf16.msra.mxu1 %v6395_v8 }
 0x101   : > { %2572 = vmatprep.subr.bf16.mxu1 %v6400_v12 }
 0x102   : > { %2532 = vmatpush2.bf16.msra.mxu0 %v6350_v3  ;;  %v784_v3 = vrot.slane %v771_v39, %v7858_v63 }
 0x103   : > { %2533 = vmatprep.subr.bf16.mxu0 %v6355_v5  ;;  %v788_v5 = vrot.slane %v771_v39, %v7861_v0  ;;  %v6430_v39 = vld [vmem:[%s8935_s6 + $0x24] ss:$8 sps:$4 sm:$0xff]  }
 0x104   : > { %2573 = vmatpush2.bf16.msra.mxu1 %v6398_v14 }
 0x105   : > { %2574 = vmatprep.subr.bf16.mxu1 %v6403_v25 }
 0x106   : > { %2534 = vmatpush2.bf16.msra.mxu0 %v6353_v7 }
 0x107   : > { %2535 = vmatprep.subr.bf16.mxu0 %v6358_v9 }
 0x108   : > { %2575 = vmatpush2.bf16.msra.mxu1 %v6401_v26 }
 0x109   : > { %2576 = vmatprep.subr.bf16.mxu1 %v6406_v31 }
 0x10a   : > { %2536 = vmatpush2.bf16.msra.mxu0 %v6356_v13 }
 0x10b   : > { %2537 = vmatprep.subr.bf16.mxu0 %v6361_v15 }
 0x10c   : > { %2577 = vmatpush2.bf16.msra.mxu1 %v6404_v11  ;;  %v6413_v11 = vld [vmem:[%s8935_s6 + $0x70] ss:$8 sps:$4 sm:$0xff]  }
 0x10d   : > { %v1811_v19 = vpop.f32.mrf.mxu0  ;;  %2578 = vmatprep.subr.bf16.mxu1 %v6409_v33  ;;  %v6416_v33 = vld [vmem:[%s8935_s6 + $0x60] ss:$8 sps:$4 sm:$0xff]  }
 0x10e   : > { %v1852_v22 = vpop.f32.mrf.mxu1  ;;  %2538 = vmatpush2.bf16.msra.mxu0 %v6359_v16  ;;  %v1812_v42 = vadd.f32 %v1811_v19, %v776_v40  ;;  %v6428_v40 = vld [vmem:[%s8935_s6 + $0x20] ss:$8 sps:$4 sm:$0xff]  }
 0x10f   : > { %v1813_v23 = vpop.f32.mrf.mxu0  ;;  %2539 = vmatprep.subr.bf16.mxu0 %v6364_v17 }
 0x110   : > { %v1854_v24 = vpop.f32.mrf.mxu1  ;;  %2579 = vmatpush2.bf16.msra.mxu1 %v6407_v20  ;;  %v1814_v43 = vadd.f32 %v1813_v23, %v780_v41  ;;  %v1853_v44 = vadd.f32 %v1852_v22, %v1812_v42  ;;  %v6421_v20 = vld [vmem:[%s8935_s6 + $0x54] ss:$8 sps:$4 sm:$0xff]   ;;  %v6431_v42 = vld [vmem:[%s8935_s6 + $0x10] ss:$8 sps:$4 sm:$0xff]  }
 0x111   : > { %v1815_v27 = vpop.f32.mrf.mxu0  ;;  %2580 = vmatprep.subr.bf16.mxu1 %v6412_v34  ;;  %v6422_v34 = vld [vmem:[%s8935_s6 + $0x40] ss:$8 sps:$4 sm:$0xff]   ;;  %v6433_v41 = vld [vmem:[%s8935_s6 + $0x14] ss:$8 sps:$4 sm:$0xff]  }
 0x112   : > { %v1856_v28 = vpop.f32.mrf.mxu1  ;;  %2540 = vmatpush2.bf16.msra.mxu0 %v6362_v18  ;;  %v1855_v46 = vadd.f32 %v1854_v24, %v1814_v43  ;;  %v6436_v43 = vld [vmem:[%s8935_s6 + $0x4] ss:$8 sps:$4 sm:$0xff]  }
 0x113   : > { %v1816_v29 = vpop.f32.mrf.mxu0 }
 0x114   : > { %v1857_v30 = vpop.f32.mrf.mxu1  ;;  %2581 = vmatpush2.bf16.msra.mxu1 %v6410_v35  ;;  %v6427_v35 = vld [vmem:[%s8935_s6 + $0x34] ss:$8 sps:$4 sm:$0xff]  }
 0x116   : > { %v1934_v2 = vpop.f32.mrf.mxu1 }
 0x118   : > { %v1936_v32 = vpop.f32.mrf.mxu1 }
 0x11a   : > { %v1938_v21 = vpop.f32.mrf.mxu1 }
 0x11b   : > { %v6419_v21 = vld [vmem:[%s8935_s6 + $0x50] ss:$8 sps:$4 sm:$0xff]  }
 0x11c   : > { %v1939_v53 = vpop.f32.mrf.mxu1 }
 0x11d   : > { %v6424_v53 = vld [vmem:[%s8935_s6 + $0x44] ss:$8 sps:$4 sm:$0xff]  }
 0x14d   : > { %v1893_v45 = vpop.f32.mrf.mxu0 }
 0x14e   : > { %v1894_v47 = vadd.f32 %v1893_v45, %v1853_v44  ;;  %v6434_v44 = vld [vmem:[%s8935_s6] ss:$8 sps:$4 sm:$0xff]   ;;  %v6439_v45 = vld [vmem:[%s8935_s6 + $0xf4] ss:$8 sps:$4 sm:$0xff]  }
 0x14f   : > { %v1895_v48 = vpop.f32.mrf.mxu0 }
 0x150   : > { %v1935_v49 = vadd.f32 %v1934_v2, %v1894_v47  ;;  %v1896_v50 = vadd.f32 %v1895_v48, %v1855_v46  ;;  %v6415_v2 = vld [vmem:[%s8935_s6 + $0x74] ss:$8 sps:$4 sm:$0xff]   ;;  %v6437_v46 = vld [vmem:[%s8935_s6 + $0xf0] ss:$8 sps:$4 sm:$0xff]   ;;  %v6442_v47 = vld [vmem:[%s8935_s6 + $0xe4] ss:$8 sps:$4 sm:$0xff]  }
 0x151   : > { %v1897_v51 = vpop.f32.mrf.mxu0  ;;  %2799 = vmatprep.subr.bf16.mxu0 %v6415_v2  ;;  %v6440_v48 = vld [vmem:[%s8935_s6 + $0xe0] ss:$8 sps:$4 sm:$0xff]   ;;  %v6478_v2 = vld [vmem:[%s8939_s10 + $0xac] ss:$16 sps:$4 sm:$0xff]  }
 0x152   : > { %v1937_v52 = vadd.f32 %v1936_v32, %v1896_v50  ;;  %v2105_v54 = vmax.f32 %v1935_v49, 0.0  ;;  %v6418_v32 = vld [vmem:[%s8935_s6 + $0x64] ss:$8 sps:$4 sm:$0xff]   ;;  %v6445_v49 = vld [vmem:[%s8935_s6 + $0xd4] ss:$8 sps:$4 sm:$0xff]  }
 0x153   : > { %v1898_v55 = vpop.f32.mrf.mxu0  ;;  %v6443_v50 = vld [vmem:[%s8935_s6 + $0xd0] ss:$8 sps:$4 sm:$0xff]   ;;  %v6448_v51 = vld [vmem:[%s8935_s6 + $0xc4] ss:$8 sps:$4 sm:$0xff]  }
 0x154   : > { %v2106_v56 = vmax.f32 %v1937_v52, 0.0  ;;  %v2109_v59 = vpack.c.bf16 %v2105_v54, %v2105_v54  ;;  %v6446_v52 = vld [vmem:[%s8935_s6 + $0xc0] ss:$8 sps:$4 sm:$0xff]   ;;  %v6451_v54 = vld [vmem:[%s8935_s6 + $0xb4] ss:$8 sps:$4 sm:$0xff]  }
 0x155   : > { %v6449_v55 = vld [vmem:[%s8935_s6 + $0xb0] ss:$8 sps:$4 sm:$0xff]  }
 0x156   : > { %v1975_v57 = vpop.f32.mrf.mxu1  ;;  %v2110_v58 = vpack.c.bf16 %v2106_v56, %v2106_v56  ;;  %v6454_v56 = vld [vmem:[%s8935_s6 + $0xa4] ss:$8 sps:$4 sm:$0xff]  }
 0x157   : > { %v1976_v7 = vadd.f32 %v1975_v57, %v784_v3  ;;  %v6452_v57 = vld [vmem:[%s8935_s6 + $0xa0] ss:$8 sps:$4 sm:$0xff]  }
 0x158   : > { %v1977_v60 = vpop.f32.mrf.mxu1  ;;  %2541 = vmatprep.mubr.bf16.mxu0 %v2110_v58  ;;  %v6457_v58 = vld [vmem:[%s8935_s6 + $0x94] ss:$8 sps:$4 sm:$0xff]  }
 0x159   : > { %2542 = vmatmul.mubr.bf16.vlgmr.msra.gmra.mxu0 %v2109_v59  ;;  %v1978_v9 = vadd.f32 %v1977_v60, %v788_v5  ;;  %v6455_v59 = vld [vmem:[%s8935_s6 + $0x90] ss:$8 sps:$4 sm:$0xff]   ;;  %v6460_v60 = vld [vmem:[%s8935_s6 + $0x84] ss:$8 sps:$4 sm:$0xff]   ;;  %v2177_v5 = vld [vmem:[%s8934_s5] sm:$0x3] }
 0x15a   : > { %v1979_v61 = vpop.f32.mrf.mxu1  ;;  %2800 = vmatpush1.bf16.msra.mxu0 %v6413_v11  ;;  %v6475_v11 = vld [vmem:[%s8939_s10 + $0xa4] ss:$16 sps:$4 sm:$0xff]  }
 0x15b   : > { %2801 = vmatprep.subr.bf16.mxu0 %v6418_v32  ;;  %v6458_v61 = vld [vmem:[%s8935_s6 + $0x80] ss:$8 sps:$4 sm:$0xff]  }
 0x15c   : > { %v1980_v62 = vpop.f32.mrf.mxu1  ;;  %v6473_v32 = vld [vmem:[%s8939_s10 + $0xa0] ss:$16 sps:$4 sm:$0xff]  }
 0x15e   : > { %2802 = vmatpush1.bf16.msra.mxu0 %v6416_v33  ;;  %v6476_v33 = vld [vmem:[%s8939_s10 + $0xa8] ss:$16 sps:$4 sm:$0xff]  }
 0x15f   : > { %2803 = vmatprep.subr.bf16.mxu0 %v6421_v20  ;;  %v6481_v20 = vld [vmem:[%s8939_s10 + $0x84] ss:$16 sps:$4 sm:$0xff]  }
 0x162   : > { %2804 = vmatpush1.bf16.msra.mxu0 %v6419_v21  ;;  %v6484_v21 = vld [vmem:[%s8939_s10 + $0x8c] ss:$16 sps:$4 sm:$0xff]  }
 0x163   : > { %2805 = vmatprep.subr.bf16.mxu0 %v6424_v53  ;;  %v6479_v53 = vld [vmem:[%s8939_s10 + $0x80] ss:$16 sps:$4 sm:$0xff]  }
 0x166   : > { %2806 = vmatpush1.bf16.msra.mxu0 %v6422_v34  ;;  %v6482_v34 = vld [vmem:[%s8939_s10 + $0x88] ss:$16 sps:$4 sm:$0xff]  }
 0x167   : > { %2807 = vmatprep.subr.bf16.mxu0 %v6427_v35  ;;  %v6487_v35 = vld [vmem:[%s8939_s10 + $0x64] ss:$16 sps:$4 sm:$0xff]  }
 0x16a   : > { %2808 = vmatpush1.bf16.msra.mxu0 %v6425_v36  ;;  %v6490_v36 = vld [vmem:[%s8939_s10 + $0x6c] ss:$16 sps:$4 sm:$0xff]  }
 0x16b   : > { %2809 = vmatprep.subr.bf16.mxu0 %v6430_v39  ;;  %v6485_v39 = vld [vmem:[%s8939_s10 + $0x60] ss:$16 sps:$4 sm:$0xff]  }
 0x16e   : > { %2810 = vmatpush1.bf16.msra.mxu0 %v6428_v40  ;;  %v6488_v40 = vld [vmem:[%s8939_s10 + $0x68] ss:$16 sps:$4 sm:$0xff]  }
 0x16f   : > { %2811 = vmatprep.subr.bf16.mxu0 %v6433_v41  ;;  %v6493_v41 = vld [vmem:[%s8939_s10 + $0x44] ss:$16 sps:$4 sm:$0xff]  }
 0x172   : > { %2812 = vmatpush1.bf16.msra.mxu0 %v6431_v42  ;;  %v6496_v42 = vld [vmem:[%s8939_s10 + $0x4c] ss:$16 sps:$4 sm:$0xff]  }
 0x173   : > { %2813 = vmatprep.subr.bf16.mxu0 %v6436_v43  ;;  %v6491_v43 = vld [vmem:[%s8939_s10 + $0x40] ss:$16 sps:$4 sm:$0xff]  }
 0x176   : > { %2814 = vmatpush1.bf16.msra.mxu0 %v6434_v44  ;;  %v6494_v44 = vld [vmem:[%s8939_s10 + $0x48] ss:$16 sps:$4 sm:$0xff]  }
 0x177   : > { %2815 = vmatprep.subr.bf16.mxu0 %v6439_v45  ;;  %v6499_v45 = vld [vmem:[%s8939_s10 + $0x24] ss:$16 sps:$4 sm:$0xff]  }
 0x17a   : > { %2816 = vmatpush2.bf16.msra.mxu0 %v6437_v46  ;;  %v6502_v46 = vld [vmem:[%s8939_s10 + $0x2c] ss:$16 sps:$4 sm:$0xff]  }
 0x17b   : > { %2817 = vmatprep.subr.bf16.mxu0 %v6442_v47  ;;  %v6497_v47 = vld [vmem:[%s8939_s10 + $0x20] ss:$16 sps:$4 sm:$0xff]  }
 0x17e   : > { %2818 = vmatpush2.bf16.msra.mxu0 %v6440_v48  ;;  %v6500_v48 = vld [vmem:[%s8939_s10 + $0x28] ss:$16 sps:$4 sm:$0xff]  }
 0x17f   : > { %2819 = vmatprep.subr.bf16.mxu0 %v6445_v49  ;;  %v6505_v49 = vld [vmem:[%s8939_s10 + $0x4] ss:$16 sps:$4 sm:$0xff]  }
 0x182   : > { %2820 = vmatpush2.bf16.msra.mxu0 %v6443_v50  ;;  %v6508_v50 = vld [vmem:[%s8939_s10 + $0xc] ss:$16 sps:$4 sm:$0xff]  }
 0x183   : > { %2821 = vmatprep.subr.bf16.mxu0 %v6448_v51  ;;  %v6503_v51 = vld [vmem:[%s8939_s10] ss:$16 sps:$4 sm:$0xff]  }
 0x186   : > { %2822 = vmatpush2.bf16.msra.mxu0 %v6446_v52  ;;  %v6506_v52 = vld [vmem:[%s8939_s10 + $0x8] ss:$16 sps:$4 sm:$0xff]  }
 0x187   : > { %2823 = vmatprep.subr.bf16.mxu0 %v6451_v54  ;;  %v6511_v54 = vld [vmem:[%s8939_s10 + $0x1e4] ss:$16 sps:$4 sm:$0xff]  }
 0x18a   : > { %2824 = vmatpush2.bf16.msra.mxu0 %v6449_v55  ;;  %v6514_v55 = vld [vmem:[%s8939_s10 + $0x1ec] ss:$16 sps:$4 sm:$0xff]  }
 0x18b   : > { %2825 = vmatprep.subr.bf16.mxu0 %v6454_v56  ;;  %v6509_v56 = vld [vmem:[%s8939_s10 + $0x1e0] ss:$16 sps:$4 sm:$0xff]  }
 0x18d   : > { %v2016_v1 = vpop.f32.mrf.mxu0 }
 0x18e   : > { %v2017_v12 = vadd.f32 %v2016_v1, %v1976_v7  ;;  %2826 = vmatpush2.bf16.msra.mxu0 %v6452_v57  ;;  %v2186_v7 = vrot.slane %v2177_v5, %v7853_v37  ;;  %v6512_v57 = vld [vmem:[%s8939_s10 + $0x1e8] ss:$16 sps:$4 sm:$0xff]  }
 0x18f   : > { %v2018_v4 = vpop.f32.mrf.mxu0  ;;  %2827 = vmatprep.subr.bf16.mxu0 %v6457_v58  ;;  %v6517_v58 = vld [vmem:[%s8939_s10 + $0x1c4] ss:$16 sps:$4 sm:$0xff]  }
 0x190   : > { %v2019_v15 = vadd.f32 %v2018_v4, %v1978_v9 }
 0x191   : > { %v2020_v6 = vpop.f32.mrf.mxu0 }
 0x192   : > { %2828 = vmatpush2.bf16.msra.mxu0 %v6455_v59  ;;  %v2182_v6 = vrot.slane %v2177_v5, %v7847_v38  ;;  %v6520_v59 = vld [vmem:[%s8939_s10 + $0x1cc] ss:$16 sps:$4 sm:$0xff]   ;;  %v6529_v5 = vld [vmem:[%s8939_s10 + $0x184] ss:$16 sps:$4 sm:$0xff]  }
 0x193   : > { %v2021_v8 = vpop.f32.mrf.mxu0  ;;  %2829 = vmatprep.subr.bf16.mxu0 %v6460_v60  ;;  %v6515_v60 = vld [vmem:[%s8939_s10 + $0x1c0] ss:$16 sps:$4 sm:$0xff]  }
 0x195   : > { %v2098_v14 = vpop.f32.mrf.mxu0 }
 0x196   : > { %v2057_v13 = vpop.f32.mrf.mxu1  ;;  %2830 = vmatpush2.bf16.msra.mxu0 %v6458_v61  ;;  %v6518_v61 = vld [vmem:[%s8939_s10 + $0x1c8] ss:$16 sps:$4 sm:$0xff]  }
 0x197   : > { %v2058_v16 = vadd.f32 %v2057_v13, %v2017_v12  ;;  %v2100_v18 = vpop.f32.mrf.mxu0 }
 0x198   : > { %v2059_v17 = vpop.f32.mrf.mxu1 }
 0x199   : > { %v2099_v19 = vadd.f32 %v2098_v14, %v2058_v16  ;;  %v2060_v22 = vadd.f32 %v2059_v17, %v2019_v15  ;;  %v2102_v24 = vpop.f32.mrf.mxu0 }
 0x19a   : > { %v2061_v23 = vpop.f32.mrf.mxu1  ;;  %v6461_v24 = vld [vmem:[%s8939_s10 + $0xe0] ss:$16 sps:$4 sm:$0xff]  }
 0x19b   : > { %v2101_v25 = vadd.f32 %v2100_v18, %v2060_v22  ;;  %v2107_v26 = vmax.f32 %v2099_v19, 0.0  ;;  %v2103_v28 = vpop.f32.mrf.mxu0 }
 0x19c   : > { %v2062_v27 = vpop.f32.mrf.mxu1  ;;  %v6469_v28 = vld [vmem:[%s8939_s10 + $0xc4] ss:$16 sps:$4 sm:$0xff]  }
 0x19d   : > { %v2108_v29 = vmax.f32 %v2101_v25, 0.0  ;;  %v2111_v31 = vpack.c.bf16 %v2107_v26, %v2107_v26  ;;  %v6463_v25 = vld [vmem:[%s8939_s10 + $0xe4] ss:$16 sps:$4 sm:$0xff]   ;;  %v6464_v26 = vld [vmem:[%s8939_s10 + $0xe8] ss:$16 sps:$4 sm:$0xff]  }
 0x19e   : > { %v6466_v27 = vld [vmem:[%s8939_s10 + $0xec] ss:$16 sps:$4 sm:$0xff]   ;;  %3323 = vmatprep.subr.bf16.mxu1 %v6463_v25  ;;  %v6535_v25 = vld [vmem:[%s8939_s10 + $0x164] ss:$16 sps:$4 sm:$0xff]  }
 0x19f   : > { %v2112_v30 = vpack.c.bf16 %v2108_v29, %v2108_v29  ;;  %v6472_v29 = vld [vmem:[%s8939_s10 + $0xcc] ss:$16 sps:$4 sm:$0xff]   ;;  %3364 = vmatprep.subr.bf16.mxu0 %v6466_v27 }
 0x1a1   : > { %2582 = vmatprep.mubr.bf16.mxu1 %v2112_v30  ;;  %v6467_v30 = vld [vmem:[%s8939_s10 + $0xc0] ss:$16 sps:$4 sm:$0xff]  }
 0x1a2   : > { %2583 = vmatmul.mubr.bf16.vlgmr.msra.gmra.mxu1 %v2111_v31  ;;  %v6470_v31 = vld [vmem:[%s8939_s10 + $0xc8] ss:$16 sps:$4 sm:$0xff]  }
 0x1a3   : > { %3324 = vmatpush1.bf16.msra.mxu1 %v6461_v24  ;;  %v2843_v24 = vld [vmem:[%s546_s20] sm:$0xff] }
 0x1a4   : > { %3325 = vmatprep.subr.bf16.mxu1 %v6469_v28  ;;  %v6533_v28 = vld [vmem:[%s8939_s10 + $0x160] ss:$16 sps:$4 sm:$0xff]  }
 0x1a7   : > { %3326 = vmatpush1.bf16.msra.mxu1 %v6467_v30 }
 0x1a8   : > { %3327 = vmatprep.subr.bf16.mxu1 %v6475_v11  ;;  %v6539_v11 = vld [vmem:[%s8939_s10 + $0x140] ss:$16 sps:$4 sm:$0xff]  }
 0x1ab   : > { %3328 = vmatpush1.bf16.msra.mxu1 %v6473_v32  ;;  %v6544_v32 = vld [vmem:[%s8939_s10 + $0x14c] ss:$16 sps:$4 sm:$0xff]  }
 0x1ac   : > { %3329 = vmatprep.subr.bf16.mxu1 %v6481_v20  ;;  %v6547_v20 = vld [vmem:[%s8939_s10 + $0x124] ss:$16 sps:$4 sm:$0xff]  }
 0x1af   : > { %3330 = vmatpush1.bf16.msra.mxu1 %v6479_v53  ;;  %v6545_v53 = vld [vmem:[%s8939_s10 + $0x120] ss:$16 sps:$4 sm:$0xff]  }
 0x1b0   : > { %3331 = vmatprep.subr.bf16.mxu1 %v6487_v35  ;;  %v6916_v35 = vmov 1  }
 0x1b3   : > { %3332 = vmatpush1.bf16.msra.mxu1 %v6485_v39  ;;  %v6556_v39 = vld [vmem:[%s8939_s10 + $0x10c] ss:$16 sps:$4 sm:$0xff]  }
 0x1b4   : > { %3333 = vmatprep.subr.bf16.mxu1 %v6493_v41  ;;  %v6554_v41 = vld [vmem:[%s8939_s10 + $0x108] ss:$16 sps:$4 sm:$0xff]  }
 0x1b7   : > { %3334 = vmatpush1.bf16.msra.mxu1 %v6491_v43  ;;  %v6562_v43 = vld [vmem:[%s8941_s12 + $0x50c] ss:$28 sps:$4 sm:$0xff]  }
 0x1b8   : > { %3335 = vmatprep.subr.bf16.mxu1 %v6499_v45 }
 0x1bb   : > { %3336 = vmatpush1.bf16.msra.mxu1 %v6497_v47 }
 0x1bc   : > { %3337 = vmatprep.subr.bf16.mxu1 %v6505_v49 }
 0x1bf   : > { %3338 = vmatpush1.bf16.msra.mxu1 %v6503_v51 }
 0x1c0   : > { %3339 = vmatprep.subr.bf16.mxu1 %v6511_v54 }
 0x1c3   : > { %3340 = vmatpush2.bf16.msra.mxu1 %v6509_v56 }
 0x1c4   : > { %3341 = vmatprep.subr.bf16.mxu1 %v6517_v58 }
 0x1c7   : > { %3342 = vmatpush2.bf16.msra.mxu1 %v6515_v60 }
 0x219   : > { %v2543_v62 = vpop.f32.mrf.mxu0 }
 0x21a   : > { %v2544_v8 = vadd.f32 %v2543_v62, %v2182_v6  ;;  %v6523_v62 = vld [vmem:[%s8939_s10 + $0x1a4] ss:$16 sps:$4 sm:$0xff]   ;;  %v6532_v6 = vld [vmem:[%s8939_s10 + $0x18c] ss:$16 sps:$4 sm:$0xff]  }
 0x21b   : > { %v2545_v1 = vpop.f32.mrf.mxu0  ;;  %3343 = vmatprep.subr.bf16.mxu1 %v6523_v62 }
 0x21c   : > { %v2546_v12 = vadd.f32 %v2545_v1, %v2186_v7  ;;  %v6526_v1 = vld [vmem:[%s8939_s10 + $0x1ac] ss:$16 sps:$4 sm:$0xff]   ;;  %v6527_v7 = vld [vmem:[%s8939_s10 + $0x180] ss:$16 sps:$4 sm:$0xff]  }
 0x21d   : > { %v2547_v3 = vpop.f32.mrf.mxu0 }
 0x21e   : > { %v6521_v3 = vld [vmem:[%s8939_s10 + $0x1a0] ss:$16 sps:$4 sm:$0xff]  }
 0x21f   : > { %v2548_v4 = vpop.f32.mrf.mxu0  ;;  %3344 = vmatpush2.bf16.msra.mxu1 %v6521_v3 }
 0x220   : > { %v6524_v4 = vld [vmem:[%s8939_s10 + $0x1a8] ss:$16 sps:$4 sm:$0xff]   ;;  %3345 = vmatprep.subr.bf16.mxu1 %v6529_v5 }
 0x223   : > { %3346 = vmatpush2.bf16.msra.mxu1 %v6527_v7 }
 0x224   : > { %3347 = vmatprep.subr.bf16.mxu1 %v6535_v25  ;;  %v6580_v25 = vld [vmem:[%s8941_s12 + $0x464] ss:$28 sps:$4 sm:$0xff]  }
 0x227   : > { %3348 = vmatpush2.bf16.msra.mxu1 %v6533_v28  ;;  %v6583_v28 = vld [vmem:[%s8941_s12 + $0xac] ss:$28 sps:$4 sm:$0xff]  }
 0x262   : > { %v2584_v9 = vpop.f32.mrf.mxu1 }
 0x263   : > { %v2585_v13 = vadd.f32 %v2584_v9, %v2544_v8  ;;  %v6530_v8 = vld [vmem:[%s8939_s10 + $0x188] ss:$16 sps:$4 sm:$0xff]   ;;  %v2627_v9 = vld [vmem:[%s8936_s7] sm:$0x3] }
 0x264   : > { %v2586_v14 = vpop.f32.mrf.mxu1 }
 0x265   : > { %v2587_v15 = vadd.f32 %v2586_v14, %v2546_v12  ;;  %v2591_v16 = vmax.f32 %v2585_v13, 0.0  ;;  %v2632_v12 = vrot.slane %v2627_v9, %v7847_v38  ;;  %v2636_v13 = vrot.slane %v2627_v9, %v7853_v37 }
 0x266   : > { %v2588_v17 = vpop.f32.mrf.mxu1 }
 0x267   : > { %v2592_v18 = vmax.f32 %v2587_v15, 0.0  ;;  %v2593_v23 = vpack.c.bf16 %v2591_v16, %v2591_v16 }
 0x268   : > { %v2589_v19 = vpop.f32.mrf.mxu1 }
 0x269   : > { %v2594_v22 = vpack.c.bf16 %v2592_v18, %v2592_v18 }
 0x26b   : > { %2831 = vmatprep.mubr.bf16.mxu0 %v2594_v22 }
 0x26c   : > { %2832 = vmatmul.mubr.bf16.vlgmr.msra.gmra.mxu0 %v2593_v23 }
 0x26d   : > { %3365 = vmatpush1.bf16.msra.mxu0 %v6464_v26  ;;  %v6538_v26 = vld [vmem:[%s8939_s10 + $0x16c] ss:$16 sps:$4 sm:$0xff]  }
 0x26e   : > { %3366 = vmatprep.subr.bf16.mxu0 %v6472_v29  ;;  %v6536_v29 = vld [vmem:[%s8939_s10 + $0x168] ss:$16 sps:$4 sm:$0xff]  }
 0x271   : > { %3367 = vmatpush1.bf16.msra.mxu0 %v6470_v31  ;;  %v6541_v31 = vld [vmem:[%s8939_s10 + $0x144] ss:$16 sps:$4 sm:$0xff]  }
 0x272   : > { %3368 = vmatprep.subr.bf16.mxu0 %v6478_v2  ;;  %v6542_v2 = vld [vmem:[%s8939_s10 + $0x148] ss:$16 sps:$4 sm:$0xff]   ;;  %3349 = vmatprep.subr.bf16.mxu1 %v6541_v31 }
 0x273   : > { %3350 = vmatpush2.bf16.msra.mxu1 %v6539_v11  ;;  %v6584_v31 = vld [vmem:[%s8941_s12 + $0x428] ss:$28 sps:$4 sm:$0xff]   ;;  %v6589_v11 = vld [vmem:[%s8941_s12 + $0x74] ss:$28 sps:$4 sm:$0xff]  }
 0x274   : > { %3351 = vmatprep.subr.bf16.mxu1 %v6547_v20  ;;  %v6595_v20 = vld [vmem:[%s8941_s12 + $0x3c] ss:$28 sps:$4 sm:$0xff]  }
 0x275   : > { %3369 = vmatpush1.bf16.msra.mxu0 %v6476_v33 }
 0x276   : > { %3370 = vmatprep.subr.bf16.mxu0 %v6484_v21  ;;  %v6550_v21 = vld [vmem:[%s8939_s10 + $0x12c] ss:$16 sps:$4 sm:$0xff]  }
 0x277   : > { %3352 = vmatpush2.bf16.msra.mxu1 %v6545_v53  ;;  %v6593_v53 = vld [vmem:[%s8941_s12 + $0x38] ss:$28 sps:$4 sm:$0xff]  }
 0x279   : > { %3371 = vmatpush1.bf16.msra.mxu0 %v6482_v34  ;;  %v6548_v34 = vld [vmem:[%s8939_s10 + $0x128] ss:$16 sps:$4 sm:$0xff]  }
 0x27a   : > { %3372 = vmatprep.subr.bf16.mxu0 %v6490_v36  ;;  %v6553_v36 = vld [vmem:[%s8939_s10 + $0x104] ss:$16 sps:$4 sm:$0xff]  }
 0x27b   : > { %3353 = vmatprep.subr.bf16.mxu1 %v6553_v36  ;;  %v6604_v36 = vld [vmem:[%s8941_s12 + $0x384] ss:$28 sps:$4 sm:$0xff]  }
 0x27d   : > { %3373 = vmatpush1.bf16.msra.mxu0 %v6488_v40  ;;  %v6551_v40 = vld [vmem:[%s8939_s10 + $0x100] ss:$16 sps:$4 sm:$0xff]  }
 0x27e   : > { %3374 = vmatprep.subr.bf16.mxu0 %v6496_v42  ;;  %3354 = vmatpush2.bf16.msra.mxu1 %v6551_v40  ;;  %v6559_v42 = vld [vmem:[%s8941_s12 + $0x18c] ss:$28 sps:$4 sm:$0xff]   ;;  %v6602_v40 = vld [vmem:[%s8941_s12 + $0x380] ss:$28 sps:$4 sm:$0xff]  }
 0x27f   : > { %4858 = vmatprep.subr.bf16.mxu1 %v6559_v42  ;;  %v6610_v42 = vld [vmem:[%s8941_s12 + $0x6cc] ss:$28 sps:$4 sm:$0xff]  }
 0x281   : > { %3375 = vmatpush1.bf16.msra.mxu0 %v6494_v44  ;;  %v2846_v44 = vld [vmem:[%s8937_s8] sm:$0xf] }
 0x282   : > { %3376 = vmatprep.subr.bf16.mxu0 %v6502_v46  ;;  %v2856_v45 = vrot.slane %v2846_v44, %v7847_v38  ;;  %v2860_v46 = vrot.slane %v2846_v44, %v7858_v63  ;;  %v2880_v47 = vrot.slane %v2846_v44, %v7853_v37 }
 0x284   : > { %v2870_v51 = vrot.slane %v2860_v46, %v7847_v38  ;;  %v6616_v46 = vld [vmem:[%s8941_s12 + $0x694] ss:$28 sps:$4 sm:$0xff]  }
 0x285   : > { %3377 = vmatpush1.bf16.msra.mxu0 %v6500_v48  ;;  %v2884_v48 = vrot.slane %v2846_v44, %v7861_v0  ;;  %v6608_v44 = vld [vmem:[%s8941_s12 + $0x6c8] ss:$28 sps:$4 sm:$0xff]  }
 0x286   : > { %3378 = vmatprep.subr.bf16.mxu0 %v6508_v50  ;;  %v2866_v50 = vrot.slane %v2856_v45, %v7847_v38  ;;  %v6613_v45 = vld [vmem:[%s8941_s12 + $0x314] ss:$28 sps:$4 sm:$0xff]  }
 0x287   : > { %v2894_v54 = vrot.slane %v2884_v48, %v7853_v37  ;;  %v6614_v48 = vld [vmem:[%s8941_s12 + $0x690] ss:$28 sps:$4 sm:$0xff]  }
 0x289   : > { %3379 = vmatpush1.bf16.msra.mxu0 %v6506_v52  ;;  %v2890_v52 = vrot.slane %v2880_v47, %v7853_v37  ;;  %v6611_v47 = vld [vmem:[%s8941_s12 + $0x310] ss:$28 sps:$4 sm:$0xff]  }
 0x28a   : > { %3380 = vmatprep.subr.bf16.mxu0 %v6514_v55  ;;  %v2899_v55 = vld [vmem:[%s8938_s9] sm:$0x3] }
 0x28b   : > { %v2904_v56 = vrot.slane %v2899_v55, %v7847_v38 }
 0x28d   : > { %3381 = vmatpush2.bf16.msra.mxu0 %v6512_v57  ;;  %v2908_v57 = vrot.slane %v2899_v55, %v7853_v37  ;;  %v6628_v55 = vld [vmem:[%s8941_s12 + $0x624] ss:$28 sps:$4 sm:$0xff]  }
 0x28e   : > { %3382 = vmatprep.subr.bf16.mxu0 %v6520_v59 }
 0x291   : > { %3383 = vmatpush2.bf16.msra.mxu0 %v6518_v61 }
 0x292   : > { %3384 = vmatprep.subr.bf16.mxu0 %v6526_v1 }
 0x295   : > { %3385 = vmatpush2.bf16.msra.mxu0 %v6524_v4 }
 0x296   : > { %3386 = vmatprep.subr.bf16.mxu0 %v6532_v6 }
 0x299   : > { %3387 = vmatpush2.bf16.msra.mxu0 %v6530_v8 }
 0x29a   : > { %3388 = vmatprep.subr.bf16.mxu0 %v6538_v26  ;;  %v6575_v26 = vld [vmem:[%s8941_s12 + $0xe0] ss:$28 sps:$4 sm:$0xff]  }
 0x29d   : > { %3389 = vmatpush2.bf16.msra.mxu0 %v6536_v29  ;;  %v6586_v29 = vld [vmem:[%s8941_s12 + $0x42c] ss:$28 sps:$4 sm:$0xff]  }
 0x29e   : > { %3390 = vmatprep.subr.bf16.mxu0 %v6544_v32  ;;  %v6587_v32 = vld [vmem:[%s8941_s12 + $0x70] ss:$28 sps:$4 sm:$0xff]  }
 0x2a1   : > { %3391 = vmatpush2.bf16.msra.mxu0 %v6542_v2  ;;  %v6592_v2 = vld [vmem:[%s8941_s12 + $0x3f4] ss:$28 sps:$4 sm:$0xff]  }
 0x2a2   : > { %3392 = vmatprep.subr.bf16.mxu0 %v6550_v21  ;;  %v6598_v21 = vld [vmem:[%s8941_s12 + $0x3bc] ss:$28 sps:$4 sm:$0xff]  }
 0x2a5   : > { %3393 = vmatpush2.bf16.msra.mxu0 %v6548_v34  ;;  %v6596_v34 = vld [vmem:[%s8941_s12 + $0x3b8] ss:$28 sps:$4 sm:$0xff]  }
 0x2a6   : > { %3394 = vmatprep.subr.bf16.mxu0 %v6556_v39  ;;  %v6599_v39 = vld [vmem:[%s8941_s12] ss:$28 sps:$4 sm:$0xff]  }
 0x2a9   : > { %3395 = vmatpush2.bf16.msra.mxu0 %v6554_v41  ;;  %v6607_v41 = vld [vmem:[%s8941_s12 + $0x34c] ss:$28 sps:$4 sm:$0xff]  }
 0x2aa   : > { %4899 = vmatprep.subr.bf16.mxu0 %v6562_v43  ;;  %v6605_v43 = vld [vmem:[%s8941_s12 + $0x348] ss:$28 sps:$4 sm:$0xff]  }
 0x32c   : > { %v2833_v14 = vpop.f32.mrf.mxu0 }
 0x32d   : > { %v2834_v15 = vadd.f32 %v2833_v14, %v2632_v12  ;;  %v6557_v12 = vld [vmem:[%s8941_s12 + $0x188] ss:$28 sps:$4 sm:$0xff]   ;;  %v6565_v14 = vld [vmem:[%s8941_s12 + $0x154] ss:$28 sps:$4 sm:$0xff]  }
 0x32e   : > { %v2835_v16 = vpop.f32.mrf.mxu0 }
 0x32f   : > { %5234 = vst.msk [vmem:[%s555_s30] sm:$0xff] %vm5233_vm1, %v2834_v15  ;;  %v2836_v17 = vadd.f32 %v2835_v16, %v2636_v13  ;;  %v6560_v13 = vld [vmem:[%s8941_s12 + $0x508] ss:$28 sps:$4 sm:$0xff]   ;;  %v6563_v16 = vld [vmem:[%s8941_s12 + $0x150] ss:$28 sps:$4 sm:$0xff]  }
 0x330   : > { %v2837_v18 = vpop.f32.mrf.mxu0 }
 0x331   : > { %v2840_v19 = vmul.f32 0.5, %v2836_v17  ;;  %5235 = vst.msk [vmem:[%s559_s18] sm:$0xff] %vm5233_vm1, %v2836_v17  ;;  %v6566_v17 = vld [vmem:[%s8941_s12 + $0x4d0] ss:$28 sps:$4 sm:$0xff]   ;;  %v6571_v18 = vld [vmem:[%s8941_s12 + $0x11c] ss:$28 sps:$4 sm:$0xff]  }
 0x332   : > { %v2838_v22 = vpop.f32.mrf.mxu0 }
 0x333   : > { %v2841_v23 = vmul.f32 1.442695, %v2840_v19  ;;  %v6574_v19 = vld [vmem:[%s8941_s12 + $0x49c] ss:$28 sps:$4 sm:$0xff]  }
 0x334   : > { %v6569_v22 = vld [vmem:[%s8941_s12 + $0x118] ss:$28 sps:$4 sm:$0xff]  }
 0x335   : > { %6877 = vpow2.f32 %v2841_v23  ;;  %v6572_v23 = vld [vmem:[%s8941_s12 + $0x498] ss:$28 sps:$4 sm:$0xff]  }
 0x342   : > { %v6878_v27 = vpop.eup %6877 }
 0x343   : > { %v2844_v30 = vmul.f32 %v6878_v27, %v2843_v24  ;;  %v6577_v24 = vld [vmem:[%s8941_s12 + $0xe4] ss:$28 sps:$4 sm:$0xff]  }
 0x344   : > { %v6578_v27 = vld [vmem:[%s8941_s12 + $0x460] ss:$28 sps:$4 sm:$0xff]  }
 0x345   : > { %v2845_v33 = vadd.f32 %v2844_v30, %v2834_v15  ;;  %v6568_v15 = vld [vmem:[%s8941_s12 + $0x4d4] ss:$28 sps:$4 sm:$0xff]   ;;  %v6581_v30 = vld [vmem:[%s8941_s12 + $0xa8] ss:$28 sps:$4 sm:$0xff]  }
 0x347   : > { %2849 = vperm.xlu0 %6021, %v2845_v33  }
 0x34b   : > { %6022 = vset.pattern.permute.xlu0 %v6916_v35  ;;  %v6601_v35 = vld [vmem:[%s8941_s12 + $0x4] ss:$28 sps:$4 sm:$0xff]  }
 0x34c   : > { %2874 = vperm.xlu0 %6022, %v2845_v33   ;;  %v6590_v33 = vld [vmem:[%s8941_s12 + $0x3f0] ss:$28 sps:$4 sm:$0xff]  }
 0x3c2   : > { %v2850_v49 = vpop.permute.xlu0 %2849 }
 0x3c3   : > { %v2871_v59 = vmul.f32 %v2866_v50, %v2850_v49  ;;  %v2872_v60 = vmul.f32 %v2870_v51, %v2850_v49  ;;  %v6619_v49 = vld [vmem:[%s8941_s12 + $0x2dc] ss:$28 sps:$4 sm:$0xff]  }
 0x3c4   : > { %v6622_v50 = vld [vmem:[%s8941_s12 + $0x65c] ss:$28 sps:$4 sm:$0xff]  }
 0x3c5   : > { %v6617_v51 = vld [vmem:[%s8941_s12 + $0x2d8] ss:$28 sps:$4 sm:$0xff]  }
 0x3c7   : > { %v2875_v58 = vpop.permute.xlu0 %2874 }
 0x3c8   : > { %v2895_v61 = vmul.f32 %v2890_v52, %v2875_v58  ;;  %v2896_v62 = vmul.f32 %v2894_v54, %v2875_v58  ;;  %v6620_v52 = vld [vmem:[%s8941_s12 + $0x658] ss:$28 sps:$4 sm:$0xff]   ;;  %v6625_v54 = vld [vmem:[%s8941_s12 + $0x2a4] ss:$28 sps:$4 sm:$0xff]   ;;  %v6631_v58 = vld [vmem:[%s8941_s12 + $0x26c] ss:$28 sps:$4 sm:$0xff]  }
 0x3ca   : > { %v2897_v1 = vadd.f32 %v2895_v61, %v2871_v59  ;;  %v2898_v3 = vadd.f32 %v2896_v62, %v2872_v60  ;;  %v6634_v59 = vld [vmem:[%s8941_s12 + $0x5ec] ss:$28 sps:$4 sm:$0xff]   ;;  %v6637_v62 = vld [vmem:[%s8941_s12 + $0x234] ss:$28 sps:$4 sm:$0xff]  }
 0x3cb   : > { %v6629_v60 = vld [vmem:[%s8941_s12 + $0x268] ss:$28 sps:$4 sm:$0xff]  }
 0x3cc   : > { %v2911_v4 = vadd.f32 %v2904_v56, %v2897_v1  ;;  %v2912_v5 = vadd.f32 %v2908_v57, %v2898_v3  ;;  %v6623_v56 = vld [vmem:[%s8941_s12 + $0x2a0] ss:$28 sps:$4 sm:$0xff]   ;;  %v6632_v61 = vld [vmem:[%s8941_s12 + $0x5e8] ss:$28 sps:$4 sm:$0xff]   ;;  %v6640_v1 = vld [vmem:[%s8941_s12 + $0x5b4] ss:$28 sps:$4 sm:$0xff]  }
 0x3cd   : > { %v6626_v57 = vld [vmem:[%s8941_s12 + $0x620] ss:$28 sps:$4 sm:$0xff]   ;;  %v6635_v3 = vld [vmem:[%s8941_s12 + $0x230] ss:$28 sps:$4 sm:$0xff]  }
 0x3ce   : > { %v2913_v6 = vmax.f32 %v2911_v4, 0.0  ;;  %v2914_v7 = vmax.f32 %v2912_v5, 0.0  ;;  %v6638_v4 = vld [vmem:[%s8941_s12 + $0x5b0] ss:$28 sps:$4 sm:$0xff]   ;;  %v6643_v5 = vld [vmem:[%s8941_s12 + $0x1fc] ss:$28 sps:$4 sm:$0xff]  }
 0x3d0   : > { %v2915_v8 = vpack.c.bf16 %v2913_v6, %v2913_v6  ;;  %v2916_v9 = vpack.c.bf16 %v2914_v7, %v2914_v7  ;;  %v6646_v6 = vld [vmem:[%s8941_s12 + $0x57c] ss:$28 sps:$4 sm:$0xff]  }
 0x3d1   : > { %v6641_v7 = vld [vmem:[%s8941_s12 + $0x1f8] ss:$28 sps:$4 sm:$0xff]  }
 0x3d2   : > { %3355 = vmatprep.mubr.bf16.mxu1 %v2916_v9  ;;  %3396 = vmatprep.mubr.bf16.mxu0 %v2916_v9  ;;  %v6649_v9 = vld [vmem:[%s8941_s12 + $0x1c4] ss:$28 sps:$4 sm:$0xff]  }
 0x3d3   : > { %3356 = vmatmul.mubr.bf16.vlgmr.msra.gmra.mxu1 %v2915_v8  ;;  %3397 = vmatmul.mubr.bf16.vlgmr.msra.gmra.mxu0 %v2915_v8  ;;  %v6644_v8 = vld [vmem:[%s8941_s12 + $0x578] ss:$28 sps:$4 sm:$0xff]  }
 0x3d4   : > { %4859 = vmatpush1.bf16.msra.mxu1 %v6557_v12  ;;  %4900 = vmatpush1.bf16.msra.mxu0 %v6560_v13  ;;  %v6652_v12 = vld [vmem:[%s8941_s12 + $0x544] ss:$28 sps:$4 sm:$0xff]  }
 0x3d5   : > { %4860 = vmatprep.subr.bf16.mxu1 %v6565_v14  ;;  %4901 = vmatprep.subr.bf16.mxu0 %v6568_v15  ;;  %v6647_v13 = vld [vmem:[%s8941_s12 + $0x1c0] ss:$28 sps:$4 sm:$0xff]   ;;  %v6655_v15 = vld [vmem:[%s8941_s12 + $0x194] ss:$28 sps:$4 sm:$0xff]  }
 0x3d6   : > { %v6650_v14 = vld [vmem:[%s8941_s12 + $0x540] ss:$28 sps:$4 sm:$0xff]  }
 0x3d8   : > { %4861 = vmatpush1.bf16.msra.mxu1 %v6563_v16  ;;  %4902 = vmatpush1.bf16.msra.mxu0 %v6566_v17  ;;  %v6658_v16 = vld [vmem:[%s8941_s12 + $0x514] ss:$28 sps:$4 sm:$0xff]   ;;  %v2981_v17 = vld [vmem:[%s8940_s11] sm:$0xf] }
 0x3d9   : > { %4862 = vmatprep.subr.bf16.mxu1 %v6571_v18  ;;  %4903 = vmatprep.subr.bf16.mxu0 %v6574_v19  ;;  %v2986_v18 = vrot.slane %v2981_v17, %v7847_v38  ;;  %v2994_v19 = vrot.slane %v2981_v17, %v7858_v63 }
 0x3dc   : > { %4863 = vmatpush1.bf16.msra.mxu1 %v6569_v22  ;;  %4904 = vmatpush1.bf16.msra.mxu0 %v6572_v23  ;;  %v2990_v22 = vrot.slane %v2981_v17, %v7853_v37  ;;  %v2998_v23 = vrot.slane %v2981_v17, %v7861_v0  ;;  %v6709_v17 = vld [vmem:[%s8941_s12 + $0x31c] ss:$28 sps:$4 sm:$0xff]  }
 0x3dd   : > { %4864 = vmatprep.subr.bf16.mxu1 %v6577_v24  ;;  %4905 = vmatprep.subr.bf16.mxu0 %v6580_v25 }
 0x3e0   : > { %4865 = vmatpush1.bf16.msra.mxu1 %v6575_v26  ;;  %4906 = vmatpush1.bf16.msra.mxu0 %v6578_v27 }
 0x3e1   : > { %4866 = vmatprep.subr.bf16.mxu1 %v6583_v28  ;;  %4907 = vmatprep.subr.bf16.mxu0 %v6586_v29 }
 0x3e4   : > { %4867 = vmatpush1.bf16.msra.mxu1 %v6581_v30  ;;  %4908 = vmatpush1.bf16.msra.mxu0 %v6584_v31 }
 0x3e5   : > { %4868 = vmatprep.subr.bf16.mxu1 %v6589_v11  ;;  %4909 = vmatprep.subr.bf16.mxu0 %v6592_v2 }
 0x3e8   : > { %4869 = vmatpush1.bf16.msra.mxu1 %v6587_v32  ;;  %4910 = vmatpush1.bf16.msra.mxu0 %v6590_v33 }
 0x3e9   : > { %4870 = vmatprep.subr.bf16.mxu1 %v6595_v20  ;;  %4911 = vmatprep.subr.bf16.mxu0 %v6598_v21 }
 0x3ec   : > { %4871 = vmatpush1.bf16.msra.mxu1 %v6593_v53  ;;  %4912 = vmatpush1.bf16.msra.mxu0 %v6596_v34 }
 0x3ed   : > { %4872 = vmatprep.subr.bf16.mxu1 %v6601_v35  ;;  %4913 = vmatprep.subr.bf16.mxu0 %v6604_v36 }
 0x3f0   : > { %4873 = vmatpush1.bf16.msra.mxu1 %v6599_v39  ;;  %4914 = vmatpush1.bf16.msra.mxu0 %v6602_v40  ;;  %v6653_v39 = vld [vmem:[%s8941_s12 + $0x190] ss:$28 sps:$4 sm:$0xff]  }
 0x3f1   : > { %4874 = vmatprep.subr.bf16.mxu1 %v6607_v41  ;;  %4915 = vmatprep.subr.bf16.mxu0 %v6610_v42  ;;  %v6656_v40 = vld [vmem:[%s8941_s12 + $0x510] ss:$28 sps:$4 sm:$0xff]  }
 0x3f4   : > { %4875 = vmatpush2.bf16.msra.mxu1 %v6605_v43  ;;  %4916 = vmatpush2.bf16.msra.mxu0 %v6608_v44  ;;  %v6661_v43 = vld [vmem:[%s8941_s12 + $0x15c] ss:$28 sps:$4 sm:$0xff]  }
 0x3f5   : > { %4876 = vmatprep.subr.bf16.mxu1 %v6613_v45  ;;  %4917 = vmatprep.subr.bf16.mxu0 %v6616_v46  ;;  %v6664_v44 = vld [vmem:[%s8941_s12 + $0x4dc] ss:$28 sps:$4 sm:$0xff]  }
 0x3f6   : > { %v6659_v45 = vld [vmem:[%s8941_s12 + $0x158] ss:$28 sps:$4 sm:$0xff]  }
 0x3f7   : > { %v6662_v46 = vld [vmem:[%s8941_s12 + $0x4d8] ss:$28 sps:$4 sm:$0xff]  }
 0x3f8   : > { %4877 = vmatpush2.bf16.msra.mxu1 %v6611_v47  ;;  %4918 = vmatpush2.bf16.msra.mxu0 %v6614_v48  ;;  %v6667_v47 = vld [vmem:[%s8941_s12 + $0x124] ss:$28 sps:$4 sm:$0xff]  }
 0x3f9   : > { %4878 = vmatprep.subr.bf16.mxu1 %v6619_v49  ;;  %4919 = vmatprep.subr.bf16.mxu0 %v6622_v50  ;;  %v6670_v48 = vld [vmem:[%s8941_s12 + $0x4a4] ss:$28 sps:$4 sm:$0xff]  }
 0x3fa   : > { %v6665_v49 = vld [vmem:[%s8941_s12 + $0x120] ss:$28 sps:$4 sm:$0xff]  }
 0x3fb   : > { %v6668_v50 = vld [vmem:[%s8941_s12 + $0x4a0] ss:$28 sps:$4 sm:$0xff]  }
 0x3fc   : > { %4879 = vmatpush2.bf16.msra.mxu1 %v6617_v51  ;;  %4920 = vmatpush2.bf16.msra.mxu0 %v6620_v52  ;;  %v6673_v51 = vld [vmem:[%s8941_s12 + $0xec] ss:$28 sps:$4 sm:$0xff]  }
 0x3fd   : > { %4880 = vmatprep.subr.bf16.mxu1 %v6625_v54  ;;  %4921 = vmatprep.subr.bf16.mxu0 %v6628_v55  ;;  %v6676_v52 = vld [vmem:[%s8941_s12 + $0x46c] ss:$28 sps:$4 sm:$0xff]  }
 0x3fe   : > { %v6671_v54 = vld [vmem:[%s8941_s12 + $0xe8] ss:$28 sps:$4 sm:$0xff]  }
 0x3ff   : > { %v6674_v55 = vld [vmem:[%s8941_s12 + $0x468] ss:$28 sps:$4 sm:$0xff]  }
 0x400   : > { %4881 = vmatpush2.bf16.msra.mxu1 %v6623_v56  ;;  %4922 = vmatpush2.bf16.msra.mxu0 %v6626_v57  ;;  %v6679_v56 = vld [vmem:[%s8941_s12 + $0xb4] ss:$28 sps:$4 sm:$0xff]  }
 0x401   : > { %4882 = vmatprep.subr.bf16.mxu1 %v6631_v58  ;;  %4923 = vmatprep.subr.bf16.mxu0 %v6634_v59  ;;  %v6682_v57 = vld [vmem:[%s8941_s12 + $0x434] ss:$28 sps:$4 sm:$0xff]  }
 0x402   : > { %v6677_v58 = vld [vmem:[%s8941_s12 + $0xb0] ss:$28 sps:$4 sm:$0xff]  }
 0x403   : > { %v6680_v59 = vld [vmem:[%s8941_s12 + $0x430] ss:$28 sps:$4 sm:$0xff]  }
 0x404   : > { %4883 = vmatpush2.bf16.msra.mxu1 %v6629_v60  ;;  %4924 = vmatpush2.bf16.msra.mxu0 %v6632_v61  ;;  %v6685_v60 = vld [vmem:[%s8941_s12 + $0x7c] ss:$28 sps:$4 sm:$0xff]  }
 0x405   : > { %4884 = vmatprep.subr.bf16.mxu1 %v6637_v62  ;;  %4925 = vmatprep.subr.bf16.mxu0 %v6640_v1  ;;  %v6688_v61 = vld [vmem:[%s8941_s12 + $0x3fc] ss:$28 sps:$4 sm:$0xff]  }
 0x406   : > { %v6683_v62 = vld [vmem:[%s8941_s12 + $0x78] ss:$28 sps:$4 sm:$0xff]  }
 0x407   : > { %v6686_v1 = vld [vmem:[%s8941_s12 + $0x3f8] ss:$28 sps:$4 sm:$0xff]  }
 0x408   : > { %4885 = vmatpush2.bf16.msra.mxu1 %v6635_v3  ;;  %4926 = vmatpush2.bf16.msra.mxu0 %v6638_v4  ;;  %v6691_v3 = vld [vmem:[%s8941_s12 + $0x44] ss:$28 sps:$4 sm:$0xff]  }
 0x409   : > { %4886 = vmatprep.subr.bf16.mxu1 %v6643_v5  ;;  %4927 = vmatprep.subr.bf16.mxu0 %v6646_v6  ;;  %v6694_v4 = vld [vmem:[%s8941_s12 + $0x3c4] ss:$28 sps:$4 sm:$0xff]  }
 0x40a   : > { %v6689_v5 = vld [vmem:[%s8941_s12 + $0x40] ss:$28 sps:$4 sm:$0xff]  }
 0x40b   : > { %v6692_v6 = vld [vmem:[%s8941_s12 + $0x3c0] ss:$28 sps:$4 sm:$0xff]  }
 0x40c   : > { %4887 = vmatpush2.bf16.msra.mxu1 %v6641_v7  ;;  %4928 = vmatpush2.bf16.msra.mxu0 %v6644_v8  ;;  %v6697_v7 = vld [vmem:[%s8941_s12 + $0xc] ss:$28 sps:$4 sm:$0xff]  }
 0x40d   : > { %4888 = vmatprep.subr.bf16.mxu1 %v6649_v9  ;;  %4929 = vmatprep.subr.bf16.mxu0 %v6652_v12  ;;  %v6700_v8 = vld [vmem:[%s8941_s12 + $0x38c] ss:$28 sps:$4 sm:$0xff]  }
 0x40e   : > { %v6695_v9 = vld [vmem:[%s8941_s12 + $0x8] ss:$28 sps:$4 sm:$0xff]  }
 0x40f   : > { %v6698_v12 = vld [vmem:[%s8941_s12 + $0x388] ss:$28 sps:$4 sm:$0xff]  }
 0x410   : > { %4889 = vmatpush2.bf16.msra.mxu1 %v6647_v13  ;;  %4930 = vmatpush2.bf16.msra.mxu0 %v6650_v14  ;;  %v6703_v13 = vld [vmem:[%s8941_s12 + $0x354] ss:$28 sps:$4 sm:$0xff]  }
 0x411   : > { %4940 = vmatprep.subr.bf16.mxu1 %v6655_v15  ;;  %4981 = vmatprep.subr.bf16.mxu0 %v6658_v16  ;;  %v6706_v14 = vld [vmem:[%s8941_s12 + $0x6d4] ss:$28 sps:$4 sm:$0xff]  }
 0x412   : > { %v6701_v15 = vld [vmem:[%s8941_s12 + $0x350] ss:$28 sps:$4 sm:$0xff]  }
 0x413   : > { %v6704_v16 = vld [vmem:[%s8941_s12 + $0x6d0] ss:$28 sps:$4 sm:$0xff]  }
 0x493   : > { %v3357_v24 = vpop.f32.mrf.mxu1  ;;  %v3398_v25 = vpop.f32.mrf.mxu0 }
 0x494   : > { %v3358_v26 = vadd.f32 %v3357_v24, %v2986_v18  ;;  %v3399_v27 = vadd.f32 %v3398_v25, %v2994_v19  ;;  %v6712_v18 = vld [vmem:[%s8941_s12 + $0x69c] ss:$28 sps:$4 sm:$0xff]   ;;  %v6718_v24 = vld [vmem:[%s8941_s12 + $0x664] ss:$28 sps:$4 sm:$0xff]  }
 0x495   : > { %v3359_v28 = vpop.f32.mrf.mxu1  ;;  %v3400_v29 = vpop.f32.mrf.mxu0  ;;  %v6707_v19 = vld [vmem:[%s8941_s12 + $0x318] ss:$28 sps:$4 sm:$0xff]   ;;  %v6713_v25 = vld [vmem:[%s8941_s12 + $0x2e0] ss:$28 sps:$4 sm:$0xff]  }
 0x496   : > { %v3360_v30 = vadd.f32 %v3359_v28, %v2990_v22  ;;  %v3401_v31 = vadd.f32 %v3400_v29, %v2998_v23  ;;  %v3405_v11 = vmax.f32 %v3358_v26, 0.0  ;;  %v3407_v2 = vmax.f32 %v3399_v27, 0.0  ;;  %v6710_v22 = vld [vmem:[%s8941_s12 + $0x698] ss:$28 sps:$4 sm:$0xff]   ;;  %v6715_v23 = vld [vmem:[%s8941_s12 + $0x2e4] ss:$28 sps:$4 sm:$0xff]  }
 0x497   : > { %v3361_v32 = vpop.f32.mrf.mxu1  ;;  %v3402_v33 = vpop.f32.mrf.mxu0  ;;  %v6716_v26 = vld [vmem:[%s8941_s12 + $0x660] ss:$28 sps:$4 sm:$0xff]   ;;  %v6721_v27 = vld [vmem:[%s8941_s12 + $0x2ac] ss:$28 sps:$4 sm:$0xff]  }
 0x498   : > { %v3406_v20 = vmax.f32 %v3360_v30, 0.0  ;;  %v3408_v21 = vmax.f32 %v3401_v31, 0.0  ;;  %v8404_v41 = vpack.c.bf16 %v3405_v11, %v3405_v11  ;;  %v8406_v42 = vpack.c.bf16 %v3407_v2, %v3407_v2  ;;  %v6724_v28 = vld [vmem:[%s8941_s12 + $0x62c] ss:$28 sps:$4 sm:$0xff]   ;;  %v6727_v31 = vld [vmem:[%s8941_s12 + $0x274] ss:$28 sps:$4 sm:$0xff]  }
 0x499   : > { %v3362_v53 = vpop.f32.mrf.mxu1  ;;  %v3403_v34 = vpop.f32.mrf.mxu0  ;;  %v6719_v29 = vld [vmem:[%s8941_s12 + $0x2a8] ss:$28 sps:$4 sm:$0xff]   ;;  %v6730_v11 = vld [vmem:[%s8941_s12 + $0x5f4] ss:$28 sps:$4 sm:$0xff]   ;;  %v6733_v33 = vld [vmem:[%s8941_s12 + $0x23c] ss:$28 sps:$4 sm:$0xff]  }
 0x49a   : > { %v8394_v35 = vpack.c.bf16 %v3406_v20, %v3406_v20  ;;  %v8396_v36 = vpack.c.bf16 %v3408_v21, %v3408_v21  ;;  %v6722_v30 = vld [vmem:[%s8941_s12 + $0x628] ss:$28 sps:$4 sm:$0xff]   ;;  %v6725_v2 = vld [vmem:[%s8941_s12 + $0x270] ss:$28 sps:$4 sm:$0xff]   ;;  %v6736_v20 = vld [vmem:[%s8941_s12 + $0x5bc] ss:$28 sps:$4 sm:$0xff]  }
 0x49b   : > { %v6728_v32 = vld [vmem:[%s8941_s12 + $0x5f0] ss:$28 sps:$4 sm:$0xff]   ;;  %v6731_v21 = vld [vmem:[%s8941_s12 + $0x238] ss:$28 sps:$4 sm:$0xff]   ;;  %v6739_v34 = vld [vmem:[%s8941_s12 + $0x204] ss:$28 sps:$4 sm:$0xff]  }
 0x49c   : > { %4890 = vmatprep.mubr.bf16.mxu1 %v8394_v35  ;;  %4931 = vmatprep.mubr.bf16.mxu0 %v8396_v36  ;;  %v6734_v53 = vld [vmem:[%s8941_s12 + $0x5b8] ss:$28 sps:$4 sm:$0xff]  }
 0x49d   : > { %4891 = vmatmul.mubr.bf16.vlgmr.msra.gmra.mxu1 %v8404_v41  ;;  %4932 = vmatmul.mubr.bf16.vlgmr.msra.gmra.mxu0 %v8406_v42 }
 0x49e   : > { %4941 = vmatpush1.bf16.msra.mxu1 %v6653_v39  ;;  %4982 = vmatpush1.bf16.msra.mxu0 %v6656_v40  ;;  %v6742_v39 = vld [vmem:[%s8941_s12 + $0x584] ss:$28 sps:$4 sm:$0xff]  }
 0x49f   : > { %4972 = vmatprep.mubr.bf16.mxu1 %v8394_v35  ;;  %5013 = vmatprep.mubr.bf16.mxu0 %v8396_v36  ;;  %v6737_v40 = vld [vmem:[%s8941_s12 + $0x200] ss:$28 sps:$4 sm:$0xff]  }
 0x4a0   : > { %4942 = vmatprep.subr.bf16.mxu1 %v6661_v43  ;;  %4983 = vmatprep.subr.bf16.mxu0 %v6664_v44  ;;  %v6740_v43 = vld [vmem:[%s8941_s12 + $0x580] ss:$28 sps:$4 sm:$0xff]   ;;  %v6745_v44 = vld [vmem:[%s8941_s12 + $0x1cc] ss:$28 sps:$4 sm:$0xff]  }
 0x4a2   : > { %4943 = vmatpush1.bf16.msra.mxu1 %v6659_v45  ;;  %4984 = vmatpush1.bf16.msra.mxu0 %v6662_v46  ;;  %v6748_v45 = vld [vmem:[%s8941_s12 + $0x54c] ss:$28 sps:$4 sm:$0xff]  }
 0x4a3   : > { %4944 = vmatprep.subr.bf16.mxu1 %v6667_v47  ;;  %4985 = vmatprep.subr.bf16.mxu0 %v6670_v48  ;;  %v6743_v46 = vld [vmem:[%s8941_s12 + $0x1c8] ss:$28 sps:$4 sm:$0xff]   ;;  %v6751_v48 = vld [vmem:[%s8941_s12 + $0x19c] ss:$28 sps:$4 sm:$0xff]  }
 0x4a4   : > { %v6746_v47 = vld [vmem:[%s8941_s12 + $0x548] ss:$28 sps:$4 sm:$0xff]  }
 0x4a6   : > { %4945 = vmatpush1.bf16.msra.mxu1 %v6665_v49  ;;  %4986 = vmatpush1.bf16.msra.mxu0 %v6668_v50  ;;  %v6754_v49 = vld [vmem:[%s8941_s12 + $0x51c] ss:$28 sps:$4 sm:$0xff]  }
 0x4a7   : > { %4946 = vmatprep.subr.bf16.mxu1 %v6673_v51  ;;  %4987 = vmatprep.subr.bf16.mxu0 %v6676_v52  ;;  %v6749_v50 = vld [vmem:[%s8941_s12 + $0x198] ss:$28 sps:$4 sm:$0xff]   ;;  %v6757_v52 = vld [vmem:[%s8941_s12 + $0x164] ss:$28 sps:$4 sm:$0xff]  }
 0x4a8   : > { %v6752_v51 = vld [vmem:[%s8941_s12 + $0x518] ss:$28 sps:$4 sm:$0xff]  }
 0x4aa   : > { %4947 = vmatpush1.bf16.msra.mxu1 %v6671_v54  ;;  %4988 = vmatpush1.bf16.msra.mxu0 %v6674_v55  ;;  %v6760_v54 = vld [vmem:[%s8941_s12 + $0x4e4] ss:$28 sps:$4 sm:$0xff]  }
 0x4ab   : > { %4948 = vmatprep.subr.bf16.mxu1 %v6679_v56  ;;  %4989 = vmatprep.subr.bf16.mxu0 %v6682_v57  ;;  %v6755_v55 = vld [vmem:[%s8941_s12 + $0x160] ss:$28 sps:$4 sm:$0xff]   ;;  %v6763_v57 = vld [vmem:[%s8941_s12 + $0x12c] ss:$28 sps:$4 sm:$0xff]  }
 0x4ac   : > { %v6758_v56 = vld [vmem:[%s8941_s12 + $0x4e0] ss:$28 sps:$4 sm:$0xff]  }
 0x4ae   : > { %4949 = vmatpush1.bf16.msra.mxu1 %v6677_v58  ;;  %4990 = vmatpush1.bf16.msra.mxu0 %v6680_v59  ;;  %v6766_v58 = vld [vmem:[%s8941_s12 + $0x4ac] ss:$28 sps:$4 sm:$0xff]  }
 0x4af   : > { %4950 = vmatprep.subr.bf16.mxu1 %v6685_v60  ;;  %4991 = vmatprep.subr.bf16.mxu0 %v6688_v61  ;;  %v6761_v59 = vld [vmem:[%s8941_s12 + $0x128] ss:$28 sps:$4 sm:$0xff]   ;;  %v6769_v61 = vld [vmem:[%s8941_s12 + $0xf4] ss:$28 sps:$4 sm:$0xff]  }
 0x4b0   : > { %v6764_v60 = vld [vmem:[%s8941_s12 + $0x4a8] ss:$28 sps:$4 sm:$0xff]  }
 0x4b2   : > { %4951 = vmatpush1.bf16.msra.mxu1 %v6683_v62  ;;  %4992 = vmatpush1.bf16.msra.mxu0 %v6686_v1  ;;  %v6772_v62 = vld [vmem:[%s8941_s12 + $0x474] ss:$28 sps:$4 sm:$0xff]  }
 0x4b3   : > { %4952 = vmatprep.subr.bf16.mxu1 %v6691_v3  ;;  %4993 = vmatprep.subr.bf16.mxu0 %v6694_v4  ;;  %v6767_v1 = vld [vmem:[%s8941_s12 + $0xf0] ss:$28 sps:$4 sm:$0xff]   ;;  %v6775_v4 = vld [vmem:[%s8941_s12 + $0xbc] ss:$28 sps:$4 sm:$0xff]  }
 0x4b4   : > { %v6770_v3 = vld [vmem:[%s8941_s12 + $0x470] ss:$28 sps:$4 sm:$0xff]  }
 0x4b6   : > { %4953 = vmatpush1.bf16.msra.mxu1 %v6689_v5  ;;  %4994 = vmatpush1.bf16.msra.mxu0 %v6692_v6  ;;  %v6778_v5 = vld [vmem:[%s8941_s12 + $0x43c] ss:$28 sps:$4 sm:$0xff]  }
 0x4b7   : > { %4954 = vmatprep.subr.bf16.mxu1 %v6697_v7  ;;  %4995 = vmatprep.subr.bf16.mxu0 %v6700_v8  ;;  %v6773_v6 = vld [vmem:[%s8941_s12 + $0xb8] ss:$28 sps:$4 sm:$0xff]   ;;  %v6781_v8 = vld [vmem:[%s8941_s12 + $0x84] ss:$28 sps:$4 sm:$0xff]  }
 0x4b8   : > { %v6776_v7 = vld [vmem:[%s8941_s12 + $0x438] ss:$28 sps:$4 sm:$0xff]  }
 0x4ba   : > { %4955 = vmatpush1.bf16.msra.mxu1 %v6695_v9  ;;  %4996 = vmatpush1.bf16.msra.mxu0 %v6698_v12  ;;  %v6784_v9 = vld [vmem:[%s8941_s12 + $0x404] ss:$28 sps:$4 sm:$0xff]  }
 0x4bb   : > { %4956 = vmatprep.subr.bf16.mxu1 %v6703_v13  ;;  %4997 = vmatprep.subr.bf16.mxu0 %v6706_v14  ;;  %v6779_v12 = vld [vmem:[%s8941_s12 + $0x80] ss:$28 sps:$4 sm:$0xff]   ;;  %v6787_v14 = vld [vmem:[%s8941_s12 + $0x4c] ss:$28 sps:$4 sm:$0xff]  }
 0x4bc   : > { %v6782_v13 = vld [vmem:[%s8941_s12 + $0x400] ss:$28 sps:$4 sm:$0xff]  }
 0x4be   : > { %4957 = vmatpush2.bf16.msra.mxu1 %v6701_v15  ;;  %4998 = vmatpush2.bf16.msra.mxu0 %v6704_v16  ;;  %v6790_v15 = vld [vmem:[%s8941_s12 + $0x3cc] ss:$28 sps:$4 sm:$0xff]  }
 0x4bf   : > { %4958 = vmatprep.subr.bf16.mxu1 %v6709_v17  ;;  %4999 = vmatprep.subr.bf16.mxu0 %v6712_v18  ;;  %v6785_v16 = vld [vmem:[%s8941_s12 + $0x48] ss:$28 sps:$4 sm:$0xff]   ;;  %v6793_v18 = vld [vmem:[%s8941_s12 + $0x14] ss:$28 sps:$4 sm:$0xff]  }
 0x4c0   : > { %v6788_v17 = vld [vmem:[%s8941_s12 + $0x3c8] ss:$28 sps:$4 sm:$0xff]  }
 0x4c2   : > { %4959 = vmatpush2.bf16.msra.mxu1 %v6707_v19  ;;  %5000 = vmatpush2.bf16.msra.mxu0 %v6710_v22  ;;  %v6796_v19 = vld [vmem:[%s8941_s12 + $0x394] ss:$28 sps:$4 sm:$0xff]  }
 0x4c3   : > { %4960 = vmatprep.subr.bf16.mxu1 %v6715_v23  ;;  %5001 = vmatprep.subr.bf16.mxu0 %v6718_v24  ;;  %v6791_v22 = vld [vmem:[%s8941_s12 + $0x10] ss:$28 sps:$4 sm:$0xff]   ;;  %v6799_v24 = vld [vmem:[%s8941_s12 + $0x35c] ss:$28 sps:$4 sm:$0xff]  }
 0x4c4   : > { %v6794_v23 = vld [vmem:[%s8941_s12 + $0x390] ss:$28 sps:$4 sm:$0xff]  }
 0x4c6   : > { %4961 = vmatpush2.bf16.msra.mxu1 %v6713_v25  ;;  %5002 = vmatpush2.bf16.msra.mxu0 %v6716_v26  ;;  %v6802_v25 = vld [vmem:[%s8941_s12 + $0x6dc] ss:$28 sps:$4 sm:$0xff]  }
 0x4c7   : > { %4962 = vmatprep.subr.bf16.mxu1 %v6721_v27  ;;  %5003 = vmatprep.subr.bf16.mxu0 %v6724_v28  ;;  %v6797_v26 = vld [vmem:[%s8941_s12 + $0x358] ss:$28 sps:$4 sm:$0xff]   ;;  %v6805_v28 = vld [vmem:[%s8941_s12 + $0x324] ss:$28 sps:$4 sm:$0xff]  }
 0x4c8   : > { %v6800_v27 = vld [vmem:[%s8941_s12 + $0x6d8] ss:$28 sps:$4 sm:$0xff]  }
 0x4ca   : > { %4963 = vmatpush2.bf16.msra.mxu1 %v6719_v29  ;;  %5004 = vmatpush2.bf16.msra.mxu0 %v6722_v30  ;;  %v6808_v29 = vld [vmem:[%s8941_s12 + $0x6a4] ss:$28 sps:$4 sm:$0xff]  }
 0x4cb   : > { %4964 = vmatprep.subr.bf16.mxu1 %v6727_v31  ;;  %5005 = vmatprep.subr.bf16.mxu0 %v6730_v11  ;;  %v6803_v30 = vld [vmem:[%s8941_s12 + $0x320] ss:$28 sps:$4 sm:$0xff]   ;;  %v6811_v11 = vld [vmem:[%s8941_s12 + $0x2ec] ss:$28 sps:$4 sm:$0xff]  }
 0x4cc   : > { %v6806_v31 = vld [vmem:[%s8941_s12 + $0x6a0] ss:$28 sps:$4 sm:$0xff]  }
 0x4ce   : > { %4965 = vmatpush2.bf16.msra.mxu1 %v6725_v2  ;;  %5006 = vmatpush2.bf16.msra.mxu0 %v6728_v32  ;;  %v6814_v2 = vld [vmem:[%s8941_s12 + $0x66c] ss:$28 sps:$4 sm:$0xff]  }
 0x4cf   : > { %4966 = vmatprep.subr.bf16.mxu1 %v6733_v33  ;;  %5007 = vmatprep.subr.bf16.mxu0 %v6736_v20  ;;  %v6809_v32 = vld [vmem:[%s8941_s12 + $0x2e8] ss:$28 sps:$4 sm:$0xff]   ;;  %v6817_v20 = vld [vmem:[%s8941_s12 + $0x2b4] ss:$28 sps:$4 sm:$0xff]  }
 0x4d0   : > { %v6812_v33 = vld [vmem:[%s8941_s12 + $0x668] ss:$28 sps:$4 sm:$0xff]  }
 0x4d2   : > { %4967 = vmatpush2.bf16.msra.mxu1 %v6731_v21  ;;  %5008 = vmatpush2.bf16.msra.mxu0 %v6734_v53  ;;  %v6820_v21 = vld [vmem:[%s8941_s12 + $0x634] ss:$28 sps:$4 sm:$0xff]  }
 0x4d3   : > { %4968 = vmatprep.subr.bf16.mxu1 %v6739_v34  ;;  %5009 = vmatprep.subr.bf16.mxu0 %v6742_v39  ;;  %v6815_v53 = vld [vmem:[%s8941_s12 + $0x2b0] ss:$28 sps:$4 sm:$0xff]   ;;  %v6823_v39 = vld [vmem:[%s8941_s12 + $0x27c] ss:$28 sps:$4 sm:$0xff]  }
 0x4d4   : > { %v6818_v34 = vld [vmem:[%s8941_s12 + $0x630] ss:$28 sps:$4 sm:$0xff]  }
 0x4d6   : > { %4969 = vmatpush2.bf16.msra.mxu1 %v6737_v40  ;;  %5010 = vmatpush2.bf16.msra.mxu0 %v6740_v43  ;;  %v6826_v40 = vld [vmem:[%s8941_s12 + $0x5fc] ss:$28 sps:$4 sm:$0xff]  }
 0x4d7   : > { %4970 = vmatprep.subr.bf16.mxu1 %v6745_v44  ;;  %5011 = vmatprep.subr.bf16.mxu0 %v6748_v45  ;;  %v6821_v43 = vld [vmem:[%s8941_s12 + $0x278] ss:$28 sps:$4 sm:$0xff]   ;;  %v6829_v45 = vld [vmem:[%s8941_s12 + $0x244] ss:$28 sps:$4 sm:$0xff]  }
 0x4d8   : > { %v6824_v44 = vld [vmem:[%s8941_s12 + $0x5f8] ss:$28 sps:$4 sm:$0xff]  }
 0x4da   : > { %4971 = vmatpush2.bf16.msra.mxu1 %v6743_v46  ;;  %5012 = vmatpush2.bf16.msra.mxu0 %v6746_v47  ;;  %v6832_v46 = vld [vmem:[%s8941_s12 + $0x5c4] ss:$28 sps:$4 sm:$0xff]  }
 0x4db   : > { %5022 = vmatprep.subr.bf16.mxu1 %v6751_v48  ;;  %5063 = vmatprep.subr.bf16.mxu0 %v6754_v49  ;;  %v6827_v47 = vld [vmem:[%s8941_s12 + $0x240] ss:$28 sps:$4 sm:$0xff]   ;;  %v6835_v49 = vld [vmem:[%s8941_s12 + $0x20c] ss:$28 sps:$4 sm:$0xff]  }
 0x4dc   : > { %v6830_v48 = vld [vmem:[%s8941_s12 + $0x5c0] ss:$28 sps:$4 sm:$0xff]  }
 0x4dd   : > { %4973 = vmatmul.mubr.bf16.vlgmr.msra.gmra.mxu1 %v8404_v41  ;;  %5014 = vmatmul.mubr.bf16.vlgmr.msra.gmra.mxu0 %v8406_v42 }
 0x4de   : > { %5023 = vmatpush1.bf16.msra.mxu1 %v6749_v50  ;;  %5054 = vmatprep.mubr.bf16.mxu1 %v8394_v35  ;;  %v6838_v50 = vld [vmem:[%s8941_s12 + $0x58c] ss:$28 sps:$4 sm:$0xff]  }
 0x4df   : > { %5064 = vmatpush1.bf16.msra.mxu0 %v6752_v51  ;;  %5095 = vmatprep.mubr.bf16.mxu0 %v8396_v36  ;;  %v6833_v51 = vld [vmem:[%s8941_s12 + $0x208] ss:$28 sps:$4 sm:$0xff]  }
 0x4e0   : > { %5024 = vmatprep.subr.bf16.mxu1 %v6757_v52  ;;  %5065 = vmatprep.subr.bf16.mxu0 %v6760_v54  ;;  %v6836_v52 = vld [vmem:[%s8941_s12 + $0x588] ss:$28 sps:$4 sm:$0xff]   ;;  %v6841_v54 = vld [vmem:[%s8941_s12 + $0x1d4] ss:$28 sps:$4 sm:$0xff]  }
 0x4e2   : > { %5025 = vmatpush1.bf16.msra.mxu1 %v6755_v55  ;;  %v6844_v55 = vld [vmem:[%s8941_s12 + $0x554] ss:$28 sps:$4 sm:$0xff]  }
 0x4e3   : > { %5066 = vmatpush1.bf16.msra.mxu0 %v6758_v56  ;;  %5026 = vmatprep.subr.bf16.mxu1 %v6763_v57  ;;  %v6839_v56 = vld [vmem:[%s8941_s12 + $0x1d0] ss:$28 sps:$4 sm:$0xff]  }
 0x4e4   : > { %5067 = vmatprep.subr.bf16.mxu0 %v6766_v58  ;;  %v6842_v57 = vld [vmem:[%s8941_s12 + $0x550] ss:$28 sps:$4 sm:$0xff]   ;;  %v6845_v58 = vld [vmem:[%s8941_s12 + $0x360] ss:$28 sps:$4 sm:$0xff]  }
 0x4e6   : > { %5027 = vmatpush1.bf16.msra.mxu1 %v6761_v59  ;;  %v6846_v59 = vld [vmem:[%s8941_s12 + $0x1a0] ss:$28 sps:$4 sm:$0xff]  }
 0x4e7   : > { %5068 = vmatpush1.bf16.msra.mxu0 %v6764_v60  ;;  %5028 = vmatprep.subr.bf16.mxu1 %v6769_v61  ;;  %v6847_v60 = vld [vmem:[%s8941_s12 + $0x328] ss:$28 sps:$4 sm:$0xff]  }
 0x4e8   : > { %5069 = vmatprep.subr.bf16.mxu0 %v6772_v62  ;;  %v6848_v61 = vld [vmem:[%s8941_s12 + $0x168] ss:$28 sps:$4 sm:$0xff]   ;;  %v6849_v62 = vld [vmem:[%s8941_s12 + $0x2f0] ss:$28 sps:$4 sm:$0xff]  }
 0x4ea   : > { %5029 = vmatpush1.bf16.msra.mxu1 %v6767_v1  ;;  %v6850_v1 = vld [vmem:[%s8941_s12 + $0x130] ss:$28 sps:$4 sm:$0xff]  }
 0x4eb   : > { %5070 = vmatpush1.bf16.msra.mxu0 %v6770_v3  ;;  %5030 = vmatprep.subr.bf16.mxu1 %v6775_v4  ;;  %v6851_v3 = vld [vmem:[%s8941_s12 + $0x2b8] ss:$28 sps:$4 sm:$0xff]   ;;  %v6853_v4 = vld [vmem:[%s8941_s12 + $0x280] ss:$28 sps:$4 sm:$0xff]  }
 0x4ec   : > { %5071 = vmatprep.subr.bf16.mxu0 %v6778_v5  ;;  %v6854_v5 = vld [vmem:[%s8941_s12 + $0xc0] ss:$28 sps:$4 sm:$0xff]  }
 0x4ee   : > { %5031 = vmatpush1.bf16.msra.mxu1 %v6773_v6  ;;  %v6855_v6 = vld [vmem:[%s8941_s12 + $0x248] ss:$28 sps:$4 sm:$0xff]  }
 0x4ef   : > { %5072 = vmatpush1.bf16.msra.mxu0 %v6776_v7  ;;  %5032 = vmatprep.subr.bf16.mxu1 %v6781_v8  ;;  %v6856_v7 = vld [vmem:[%s8941_s12 + $0x88] ss:$28 sps:$4 sm:$0xff]   ;;  %v6857_v8 = vld [vmem:[%s8941_s12 + $0x210] ss:$28 sps:$4 sm:$0xff]  }
 0x4f0   : > { %5073 = vmatprep.subr.bf16.mxu0 %v6784_v9  ;;  %v6858_v9 = vld [vmem:[%s8941_s12 + $0x50] ss:$28 sps:$4 sm:$0xff]  }
 0x4f2   : > { %5033 = vmatpush1.bf16.msra.mxu1 %v6779_v12  ;;  %v6859_v12 = vld [vmem:[%s8941_s12 + $0x1d8] ss:$28 sps:$4 sm:$0xff]  }
 0x4f3   : > { %5074 = vmatpush1.bf16.msra.mxu0 %v6782_v13  ;;  %5034 = vmatprep.subr.bf16.mxu1 %v6787_v14  ;;  %v6860_v13 = vld [vmem:[%s8941_s12 + $0x18] ss:$28 sps:$4 sm:$0xff]   ;;  %v6861_v14 = vld [vmem:[%s8941_s12 + $0x6e0] ss:$28 sps:$4 sm:$0xff]  }
 0x4f4   : > { %5075 = vmatprep.subr.bf16.mxu0 %v6790_v15  ;;  %v6862_v15 = vld [vmem:[%s8941_s12 + $0x520] ss:$28 sps:$4 sm:$0xff]  }
 0x4f6   : > { %5035 = vmatpush1.bf16.msra.mxu1 %v6785_v16  ;;  %v6863_v16 = vld [vmem:[%s8941_s12 + $0x6a8] ss:$28 sps:$4 sm:$0xff]  }
 0x4f7   : > { %5076 = vmatpush1.bf16.msra.mxu0 %v6788_v17  ;;  %5036 = vmatprep.subr.bf16.mxu1 %v6793_v18  ;;  %v6864_v17 = vld [vmem:[%s8941_s12 + $0x4e8] ss:$28 sps:$4 sm:$0xff]   ;;  %v6865_v18 = vld [vmem:[%s8941_s12 + $0x670] ss:$28 sps:$4 sm:$0xff]  }
 0x4f8   : > { %5077 = vmatprep.subr.bf16.mxu0 %v6796_v19  ;;  %v6866_v19 = vld [vmem:[%s8941_s12 + $0x4b0] ss:$28 sps:$4 sm:$0xff]  }
 0x4fa   : > { %5037 = vmatpush1.bf16.msra.mxu1 %v6791_v22  ;;  %v6869_v22 = vld [vmem:[%s8941_s12 + $0x600] ss:$28 sps:$4 sm:$0xff]  }
 0x4fb   : > { %5078 = vmatpush1.bf16.msra.mxu0 %v6794_v23  ;;  %5038 = vmatprep.subr.bf16.mxu1 %v6799_v24  ;;  %v6870_v23 = vld [vmem:[%s8941_s12 + $0x440] ss:$28 sps:$4 sm:$0xff]   ;;  %v6871_v24 = vld [vmem:[%s8941_s12 + $0x5c8] ss:$28 sps:$4 sm:$0xff]  }
 0x4fc   : > { %5079 = vmatprep.subr.bf16.mxu0 %v6802_v25  ;;  %v6872_v25 = vld [vmem:[%s8941_s12 + $0x408] ss:$28 sps:$4 sm:$0xff]  }
 0x4fe   : > { %5039 = vmatpush2.bf16.msra.mxu1 %v6797_v26  ;;  %v6873_v26 = vld [vmem:[%s8941_s12 + $0x590] ss:$28 sps:$4 sm:$0xff]  }
 0x4ff   : > { %5080 = vmatpush2.bf16.msra.mxu0 %v6800_v27  ;;  %5040 = vmatprep.subr.bf16.mxu1 %v6805_v28  ;;  %v6874_v27 = vld [vmem:[%s8941_s12 + $0x3d0] ss:$28 sps:$4 sm:$0xff]   ;;  %v6875_v28 = vld [vmem:[%s8941_s12 + $0x558] ss:$28 sps:$4 sm:$0xff]  }
 0x500   : > { %5081 = vmatprep.subr.bf16.mxu0 %v6808_v29  ;;  %v6876_v29 = vld [vmem:[%s8941_s12 + $0x398] ss:$28 sps:$4 sm:$0xff]  }
 0x502   : > { %5041 = vmatpush2.bf16.msra.mxu1 %v6803_v30  ;;  %v8894_v30 = vld [vmem:[%s8942_s13] sm:$0x7f] }
 0x503   : > { %5082 = vmatpush2.bf16.msra.mxu0 %v6806_v31  ;;  %5042 = vmatprep.subr.bf16.mxu1 %v6811_v11  ;;  %v3674_v31 = vrot.slane %v8894_v30, %v7847_v38  ;;  %v3678_v11 = vrot.slane %v8894_v30, %v7853_v37 }
 0x504   : > { %5083 = vmatprep.subr.bf16.mxu0 %v6814_v2 }
 0x506   : > { %5043 = vmatpush2.bf16.msra.mxu1 %v6809_v32 }
 0x507   : > { %5084 = vmatpush2.bf16.msra.mxu0 %v6812_v33  ;;  %5044 = vmatprep.subr.bf16.mxu1 %v6817_v20 }
 0x508   : > { %5085 = vmatprep.subr.bf16.mxu0 %v6820_v21 }
 0x50a   : > { %5045 = vmatpush2.bf16.msra.mxu1 %v6815_v53 }
 0x50b   : > { %5086 = vmatpush2.bf16.msra.mxu0 %v6818_v34  ;;  %5046 = vmatprep.subr.bf16.mxu1 %v6823_v39 }
 0x50c   : > { %5087 = vmatprep.subr.bf16.mxu0 %v6826_v40 }
 0x50e   : > { %5047 = vmatpush2.bf16.msra.mxu1 %v6821_v43 }
 0x50f   : > { %5088 = vmatpush2.bf16.msra.mxu0 %v6824_v44  ;;  %5048 = vmatprep.subr.bf16.mxu1 %v6829_v45 }
 0x510   : > { %5089 = vmatprep.subr.bf16.mxu0 %v6832_v46 }
 0x512   : > { %5049 = vmatpush2.bf16.msra.mxu1 %v6827_v47 }
 0x513   : > { %5090 = vmatpush2.bf16.msra.mxu0 %v6830_v48  ;;  %5050 = vmatprep.subr.bf16.mxu1 %v6835_v49 }
 0x514   : > { %5091 = vmatprep.subr.bf16.mxu0 %v6838_v50 }
 0x516   : > { %5051 = vmatpush2.bf16.msra.mxu1 %v6833_v51  ;;  %v3682_v51 = vrot.slane %v8894_v30, %v7858_v63 }
 0x517   : > { %5092 = vmatpush2.bf16.msra.mxu0 %v6836_v52  ;;  %5052 = vmatprep.subr.bf16.mxu1 %v6841_v54  ;;  %v3686_v52 = vrot.slane %v8894_v30, %v7861_v0 }
 0x518   : > { %5093 = vmatprep.subr.bf16.mxu0 %v6844_v55 }
 0x51a   : > { %5053 = vmatpush2.bf16.msra.mxu1 %v6839_v56 }
 0x51b   : > { %5094 = vmatpush2.bf16.msra.mxu0 %v6842_v57  ;;  %5966 = vmatprep.subr.bf16.mxu1 %v6845_v58 }
 0x51d   : > { %5055 = vmatmul.mubr.bf16.vlgmr.msra.gmra.mxu1 %v8404_v41 }
 0x51e   : > { %5096 = vmatmul.mubr.bf16.vlgmr.msra.gmra.mxu0 %v8406_v42  ;;  %5967 = vmatpush3.bf16.msra.mxu1 %v6846_v59 }
 0x51f   : > { %5136 = vmatprep.mubr.bf16.mxu1 %v8394_v35  ;;  %5968 = vmatprep.subr.bf16.mxu1 %v6847_v60  ;;  %v6852_v35 = vld [vmem:[%s8941_s12 + $0xf8] ss:$28 sps:$4 sm:$0xff]  }
 0x522   : > { %5969 = vmatpush3.bf16.msra.mxu1 %v6848_v61 }
 0x523   : > { %5970 = vmatprep.subr.bf16.mxu1 %v6849_v62 }
 0x526   : > { %5971 = vmatpush3.bf16.msra.mxu1 %v6850_v1 }
 0x527   : > { %5972 = vmatprep.subr.bf16.mxu1 %v6851_v3 }
 0x52a   : > { %5973 = vmatpush3.bf16.msra.mxu1 %v6852_v35 }
 0x52b   : > { %5974 = vmatprep.subr.bf16.mxu1 %v6853_v4 }
 0x52e   : > { %5975 = vmatpush3.bf16.msra.mxu1 %v6854_v5 }
 0x52f   : > { %5976 = vmatprep.subr.bf16.mxu1 %v6855_v6 }
 0x532   : > { %5977 = vmatpush3.bf16.msra.mxu1 %v6856_v7 }
 0x533   : > { %5978 = vmatprep.subr.bf16.mxu1 %v6857_v8 }
 0x536   : > { %5979 = vmatpush3.bf16.msra.mxu1 %v6858_v9 }
 0x537   : > { %5980 = vmatprep.subr.bf16.mxu1 %v6859_v12  ;;  %v3689_v12 = vsub.s32 4, %v7844_v10 }
 0x53a   : > { %5981 = vmatpush3.bf16.msra.mxu1 %v6860_v13  ;;  %v3693_v13 = vsub.s32 5, %v7844_v10 }
 0x53b   : > { %5988 = vmatprep.subr.bf16.mxu1 %v6861_v14  ;;  %v3690_v14 = vrot.slane %v8894_v30, %v3689_v12 }
 0x53d   : > { %5137 = vmatmul.mubr.bf16.vlgmr.msra.gmra.mxu1 %v8404_v41  ;;  %v6867_v41 = vld [vmem:[%s8941_s12 + $0x638] ss:$28 sps:$4 sm:$0xff]  }
 0x53e   : > { %5989 = vmatpush3.bf16.msra.mxu1 %v6862_v15  ;;  %5176 = vmatprep.mubr.bf16.mxu1 %v8396_v36  ;;  %v6868_v36 = vld [vmem:[%s8941_s12 + $0x478] ss:$28 sps:$4 sm:$0xff]   ;;  %v3694_v15 = vrot.slane %v8894_v30, %v3693_v13 }
 0x53f   : > { %5990 = vmatprep.subr.bf16.mxu1 %v6863_v16 }
 0x542   : > { %5991 = vmatpush3.bf16.msra.mxu1 %v6864_v17 }
 0x543   : > { %5992 = vmatprep.subr.bf16.mxu1 %v6865_v18 }
 0x546   : > { %5993 = vmatpush3.bf16.msra.mxu1 %v6866_v19 }
 0x547   : > { %5994 = vmatprep.subr.bf16.mxu1 %v6867_v41 }
 0x54a   : > { %5995 = vmatpush3.bf16.msra.mxu1 %v6868_v36 }
 0x54b   : > { %5996 = vmatprep.subr.bf16.mxu1 %v6869_v22 }
 0x54e   : > { %5997 = vmatpush3.bf16.msra.mxu1 %v6870_v23 }
 0x54f   : > { %5998 = vmatprep.subr.bf16.mxu1 %v6871_v24 }
 0x552   : > { %5999 = vmatpush3.bf16.msra.mxu1 %v6872_v25 }
 0x553   : > { %6000 = vmatprep.subr.bf16.mxu1 %v6873_v26 }
 0x556   : > { %6001 = vmatpush3.bf16.msra.mxu1 %v6874_v27 }
 0x557   : > { %6002 = vmatprep.subr.bf16.mxu1 %v6875_v28 }
 0x55a   : > { %6003 = vmatpush3.bf16.msra.mxu1 %v6876_v29 }
 0x55d   : > { %5177 = vmatmul.mubr.bf16.vlgmr.msra.gmra.mxu1 %v8406_v42  ;;  %v4892_v2 = vpop.f32.mrf.mxu1  ;;  %v4933_v32 = vpop.f32.mrf.mxu0 }
 0x55e   : > { %v4893_v33 = vadd.f32 %v4892_v2, %v3674_v31 }
 0x55f   : > { %v4894_v20 = vpop.f32.mrf.mxu1  ;;  %v4935_v21 = vpop.f32.mrf.mxu0 }
 0x560   : > { %v4934_v53 = vadd.f32 %v4933_v32, %v4893_v33  ;;  %v4895_v34 = vadd.f32 %v4894_v20, %v3678_v11 }
 0x561   : > { %v4896_v39 = vpop.f32.mrf.mxu1  ;;  %v4937_v40 = vpop.f32.mrf.mxu0 }
 0x562   : > { %v5957_v43 = vmul.f32 -1.442695, %v4934_v53  ;;  %v4936_v44 = vadd.f32 %v4935_v21, %v4895_v34  ;;  %v3697_v40 = vsub.s32 6, %v7844_v10 }
 0x563   : > { %v4897_v45 = vpop.f32.mrf.mxu1  ;;  %v4938_v46 = vpop.f32.mrf.mxu0 }
 0x564   : > { %6879 = vpow2.f32 %v5957_v43  ;;  %v5958_v38 = vmul.f32 -1.442695, %v4936_v44  ;;  %v3698_v43 = vrot.slane %v8894_v30, %v3697_v40 }
 0x566   : > { %6881 = vpow2.f32 %v5958_v38 }
 0x571   : > { %v6880_v37 = vpop.eup %6879 }
 0x572   : > { %v5205_v47 = vadd.f32 1.0, %v6880_v37 }
 0x573   : > { %v6882_v42 = vpop.eup %6881 }
 0x574   : > { %6883 = vrcp.f32 %v5205_v47  ;;  %v5206_v48 = vadd.f32 1.0, %v6882_v42 }
 0x576   : > { %6885 = vrcp.f32 %v5206_v48 }
 0x581   : > { %v6884_v49 = vpop.eup %6883 }
 0x582   : > { %5226 = vst [vmem:[%s8906_s19] sm:$0xff] %v6884_v49 }
 0x583   : > { %v6886_v50 = vpop.eup %6885 }
 0x584   : > { %5227 = vst [vmem:[%s8906_s19 + $0x8] sm:$0xff] %v6886_v50 }
 0x59d   : > { %v4974_v54 = vpop.f32.mrf.mxu1  ;;  %v5015_v55 = vpop.f32.mrf.mxu0 }
 0x59e   : > { %v4975_v56 = vadd.f32 %v4974_v54, %v3682_v51 }
 0x59f   : > { %v4976_v57 = vpop.f32.mrf.mxu1  ;;  %v5017_v58 = vpop.f32.mrf.mxu0 }
 0x5a0   : > { %v5016_v59 = vadd.f32 %v5015_v55, %v4975_v56  ;;  %v4977_v60 = vadd.f32 %v4976_v57, %v3686_v52 }
 0x5a1   : > { %v4978_v61 = vpop.f32.mrf.mxu1  ;;  %v5019_v62 = vpop.f32.mrf.mxu0 }
 0x5a2   : > { %v5959_v1 = vmul.f32 -1.442695, %v5016_v59  ;;  %v5018_v3 = vadd.f32 %v5017_v58, %v4977_v60 }
 0x5a3   : > { %v4979_v35 = vpop.f32.mrf.mxu1  ;;  %v5020_v4 = vpop.f32.mrf.mxu0 }
 0x5a4   : > { %6887 = vpow2.f32 %v5959_v1  ;;  %v5960_v63 = vmul.f32 -1.442695, %v5018_v3 }
 0x5a6   : > { %6889 = vpow2.f32 %v5960_v63 }
 0x5b1   : > { %v6888_v5 = vpop.eup %6887 }
 0x5b2   : > { %v5207_v0 = vadd.f32 1.0, %v6888_v5 }
 0x5b3   : > { %v6890_v6 = vpop.eup %6889 }
 0x5b4   : > { %6891 = vrcp.f32 %v5207_v0  ;;  %v5208_v7 = vadd.f32 1.0, %v6890_v6 }
 0x5b6   : > { %6893 = vrcp.f32 %v5208_v7 }
 0x5c1   : > { %v6892_v8 = vpop.eup %6891 }
 0x5c2   : > { %5228 = vst [vmem:[%s8906_s19 + $0x10] sm:$0xff] %v6892_v8 }
 0x5c3   : > { %v6894_v9 = vpop.eup %6893 }
 0x5c4   : > { %5229 = vst [vmem:[%s8906_s19 + $0x18] sm:$0xff] %v6894_v9 }
 0x5dd   : > { %v5056_v16 = vpop.f32.mrf.mxu1 }
 0x5de   : > { %v5057_v17 = vadd.f32 %v5056_v16, %v3690_v14  ;;  %v5097_v18 = vpop.f32.mrf.mxu0 }
 0x5df   : > { %v5058_v19 = vpop.f32.mrf.mxu1 }
 0x5e0   : > { %v5098_v41 = vadd.f32 %v5097_v18, %v5057_v17  ;;  %v5059_v36 = vadd.f32 %v5058_v19, %v3694_v15  ;;  %v5099_v22 = vpop.f32.mrf.mxu0 }
 0x5e1   : > { %v5060_v23 = vpop.f32.mrf.mxu1 }
 0x5e2   : > { %v5961_v24 = vmul.f32 -1.442695, %v5098_v41  ;;  %v5100_v25 = vadd.f32 %v5099_v22, %v5059_v36  ;;  %v5101_v26 = vpop.f32.mrf.mxu0 }
 0x5e3   : > { %v5061_v27 = vpop.f32.mrf.mxu1 }
 0x5e4   : > { %6895 = vpow2.f32 %v5961_v24  ;;  %v5962_v28 = vmul.f32 -1.442695, %v5100_v25  ;;  %v5102_v29 = vpop.f32.mrf.mxu0 }
 0x5e6   : > { %6897 = vpow2.f32 %v5962_v28 }
 0x5f1   : > { %v6896_v31 = vpop.eup %6895 }
 0x5f2   : > { %v5209_v11 = vadd.f32 1.0, %v6896_v31 }
 0x5f3   : > { %v6898_v2 = vpop.eup %6897 }
 0x5f4   : > { %6899 = vrcp.f32 %v5209_v11  ;;  %v5210_v32 = vadd.f32 1.0, %v6898_v2 }
 0x5f6   : > { %6901 = vrcp.f32 %v5210_v32 }
 0x5fd   : > { %v5982_v33 = vpop.f32.mrf.mxu1 }
 0x5ff   : > { %v5983_v20 = vpop.f32.mrf.mxu1 }
 0x600   : > { %v5984_v44 = vadd.f32 %v5983_v20, %v5982_v33 }
 0x601   : > { %v6900_v21 = vpop.eup %6899  ;;  %v5985_v53 = vpop.f32.mrf.mxu1 }
 0x602   : > { %5230 = vst [vmem:[%s8906_s19 + $0x20] sm:$0xff] %v6900_v21  ;;  %v5139_v38 = vadd.f32 %v5984_v44, %v3698_v43 }
 0x603   : > { %v6902_v34 = vpop.eup %6901  ;;  %v5986_v39 = vpop.f32.mrf.mxu1 }
 0x604   : > { %5231 = vst [vmem:[%s8906_s19 + $0x28] sm:$0xff] %v6902_v34 }
 0x61d   : > { %v6004_v45 = vpop.f32.mrf.mxu1 }
 0x61f   : > { %v6005_v46 = vpop.f32.mrf.mxu1 }
 0x620   : > { %v6006_v37 = vadd.f32 %v6005_v46, %v6004_v45 }
 0x621   : > { %v6007_v47 = vpop.f32.mrf.mxu1 }
 0x622   : > { %v5179_v42 = vadd.f32 %v6006_v37, %v5139_v38 }
 0x623   : > { %v6008_v48 = vpop.f32.mrf.mxu1 }
 0x624   : > { %v5963_v49 = vmul.f32 -1.442695, %v5179_v42 }
 0x626   : > { %6903 = vpow2.f32 %v5963_v49 }
 0x633   : > { %v6904_v50 = vpop.eup %6903 }
 0x634   : > { %v5211_v51 = vadd.f32 1.0, %v6904_v50 }
 0x636   : > { %6905 = vrcp.f32 %v5211_v51 }
 0x643   : > { %v6906_v52 = vpop.eup %6905 }
 0x644   : > { %5232 = vst.msk [vmem:[%s8906_s19 + $0x30] sm:$0xff] %vm1773_vm0, %v6906_v52 }
 0x645 PF: > { %s27_s21 = sadd.s32 1, %s6913_s21  }
 0x646   : > { %p24_p4 = scmp.ge.s32.totalorder %s27_s21, 4  }
 0x648   :  { %26 = sbr.rel (!%p24_p4) target bundleno = 2 (0x2), region = 133 }

</bundles_post_ra>
